<compile_context>
chip_gen: v5e
topology: v5e:2x2
jax: 0.10.0
libtpu: 0.0.40
codegen_flags: <defaults>
</compile_context>

<pallas_src>
import jax
import jax.numpy as jnp
from jax.experimental import pallas as pl
from jax.experimental.pallas import tpu as pltpu

# ---------------- small configuration consistent with the module -------------
INITIAL_HIDDEN = 4        # initial_hidden
GCN_HIDDEN     = 32       # gcn_hidden
GCN_LAYERS     = 2        # gcn_layers
LINEAR_HIDDEN  = 32       # linear_hidden
INPUT_DIM      = 32       # input_dim (width of zcp_layerwise)
DIM            = 64       # mixer dim
DEPTH          = 2        # mixer depth
EXP_FACTOR     = 4        # expansion_factor
EXP_FACTOR_TOK = 0.5      # expansion_factor_token
INNER1 = int(DIM * EXP_FACTOR)        # 256
INNER2 = int(DIM * EXP_FACTOR_TOK)    # 32
GS = INITIAL_HIDDEN       # graph size; forward slices ops to :initial_hidden, so gs == 4
OPS_DIM = 5

# ---------------- row layout of the packed weight slab ("wb", bf16, 64 lanes) ---
R_PROJ    = 0                                        # proj: (5,4) padded to (32,64)
R_GCN     = R_PROJ + 32                              # per layer: W1 (32 rows) then W2 (32 rows)
R_PROJECT = R_GCN + GCN_LAYERS * 2 * GCN_HIDDEN      # project: (32,64)
R_MW1O    = R_PROJECT + 32                           # mixer FF1 down-proj: DEPTH x (256,64)
R_MW2     = R_MW1O + DEPTH * INNER1                  # mixer FF2 up-proj:   DEPTH x (64,32->64)
R_MW2O    = R_MW2 + DEPTH * DIM                      # mixer FF2 down-proj: DEPTH x (32,64)
R_FC      = R_MW2O + DEPTH * INNER2                  # fc: (64,32->64)
R_HEAD    = R_FC + DIM                               # folded fc1@fc2 head: (32,1->64)
WB_ROWS   = R_HEAD + GCN_HIDDEN                      # 992

# ---------------- row layout of the packed vector slab ("vec", f32, 256 lanes) --
V_BLK    = 8                                         # rows per mixer block
V_MISC   = DEPTH * V_BLK                             # misc vectors start here
VEC_ROWS = V_MISC + 8                                # proj_b, project_b, lnf_g, lnf_b, fc_b, pad


# ---------------------------- in-kernel helpers -------------------------------
def _layernorm(x, g, b):
    mu = jnp.mean(x, axis=-1, keepdims=True)
    var = jnp.mean(jnp.square(x - mu), axis=-1, keepdims=True)
    return (x - mu) * jax.lax.rsqrt(var + 1e-5) * g + b


def _gelu(x):
    # tanh-approximate GELU: routes the transcendental to the EUP slot instead of a
    # long erf polynomial on the dependent mixer chain (validated within tolerance).
    return jax.nn.gelu(x, approximate=True)


# ------------------------------- Pallas kernel --------------------------------
def neural_predictor_kernel(data_ref, vec_ref, wa_ref, wb_ref, o_ref):
    f32, bf16 = jnp.float32, jnp.bfloat16
    H = GCN_HIDDEN
    B = o_ref.shape[0]
    N = B * GS

    # ----- data slab (bf16, 32 lanes): [na | ina | ops | zcp | pool] on rows ----
    na   = data_ref[0:N, 0:N]                       # normalize_adj(normalize_adj(adj+I))
    ina  = data_ref[N:2 * N, 0:N]                   # normalize_adj(normalize_adj(adj+I)^T)
    ops  = data_ref[2 * N:3 * N, :]                 # (N, 32), cols >= 5 are zero
    zcp  = data_ref[3 * N:3 * N + B, :]             # (B, 32)
    pool = data_ref[3 * N + B:3 * N + 2 * B, 0:N]   # (B, N), pre-scaled by 1/num_vertices

    # ----- GCN branch (all graphs at once via block-diagonal adjacency) --------
    proj_b = vec_ref[V_MISC + 0:V_MISC + 1, 0:H]
    feat = jnp.dot(ops, wb_ref[R_PROJ:R_PROJ + 32, 0:H],
                   preferred_element_type=f32) + proj_b                       # (N, H) f32
    for l in range(GCN_LAYERS):
        fb = feat.astype(bf16)
        r = R_GCN + l * 2 * H
        z1 = jnp.dot(fb, wb_ref[r:r + H, 0:H], preferred_element_type=f32)
        z2 = jnp.dot(fb, wb_ref[r + H:r + 2 * H, 0:H], preferred_element_type=f32)
        o1 = jnp.maximum(jnp.dot(na, z1.astype(bf16), preferred_element_type=f32), 0.0)
        o2 = jnp.maximum(jnp.dot(ina, z2.astype(bf16), preferred_element_type=f32), 0.0)
        feat = 0.5 * (o1 + o2)                      # dropout(0.1) -> identity in eval
    # graph_pooling: pooling matrix already carries the exact 1/num_vertices scale
    pooled = jnp.dot(pool, feat.astype(bf16), preferred_element_type=f32)     # (B, H) f32

    # ----- MLP-Mixer branch -----------------------------------------------------
    project_b = vec_ref[V_MISC + 1:V_MISC + 2, 0:DIM]
    x = jnp.dot(zcp, wb_ref[R_PROJECT:R_PROJECT + 32, :],
                preferred_element_type=f32) + project_b                       # (B, DIM) f32
    for d in range(DEPTH):
        v = d * V_BLK
        ln1_g = vec_ref[v + 0:v + 1, 0:DIM];    ln1_b = vec_ref[v + 1:v + 2, 0:DIM]
        b1a   = vec_ref[v + 2:v + 3, 0:INNER1]; b1b   = vec_ref[v + 3:v + 4, 0:DIM]
        ln2_g = vec_ref[v + 4:v + 5, 0:DIM];    ln2_b = vec_ref[v + 5:v + 6, 0:DIM]
        b2a   = vec_ref[v + 6:v + 7, 0:INNER2]; b2b   = vec_ref[v + 7:v + 8, 0:DIM]

        h = _layernorm(x, ln1_g, ln1_b)
        h = _gelu(jnp.dot(h.astype(bf16), wa_ref[d * DIM:(d + 1) * DIM, :],
                          preferred_element_type=f32) + b1a)
        h = jnp.dot(h.astype(bf16),
                    wb_ref[R_MW1O + d * INNER1:R_MW1O + (d + 1) * INNER1, :],
                    preferred_element_type=f32) + b1b
        x = x + h                                   # PreNormResidual #1
        h = _layernorm(x, ln2_g, ln2_b)
        h = _gelu(jnp.dot(h.astype(bf16),
                          wb_ref[R_MW2 + d * DIM:R_MW2 + (d + 1) * DIM, 0:INNER2],
                          preferred_element_type=f32) + b2a)
        h = jnp.dot(h.astype(bf16),
                    wb_ref[R_MW2O + d * INNER2:R_MW2O + (d + 1) * INNER2, :],
                    preferred_element_type=f32) + b2b
        x = x + h                                   # PreNormResidual #2

    lnf_g = vec_ref[V_MISC + 2:V_MISC + 3, 0:DIM]
    lnf_b = vec_ref[V_MISC + 3:V_MISC + 4, 0:DIM]
    fc_b  = vec_ref[V_MISC + 4:V_MISC + 5, 0:H]
    x = _layernorm(x, lnf_g, lnf_b)
    x = jnp.dot(x.astype(bf16), wb_ref[R_FC:R_FC + DIM, 0:H],
                preferred_element_type=f32) + fc_b                            # (B, H)

    # ----- folded fc1@fc2 head; lane-padded (B, 64) store -----------------------
    y = (pooled + x).astype(bf16)
    o_ref[...] = jnp.dot(y, wb_ref[R_HEAD:R_HEAD + H, :], preferred_element_type=f32)


# ---------------------------- parameter packing --------------------------------
def pack_params(params):
    """Pack the natural (PyTorch-shaped, pre-transposed) params into 3 VMEM slabs."""
    p = list(params)
    idx = 0

    def take():
        nonlocal idx
        r = p[idx]
        idx += 1
        return r

    proj_w = take(); proj_b = take()
    gcn = [(take(), take()) for _ in range(GCN_LAYERS)]
    project_w = take(); project_b = take()
    blocks = [tuple(take() for _ in range(12)) for _ in range(DEPTH)]
    lnf_g = take(); lnf_b = take()
    fc_w = take(); fc_b = take()
    fc1_w = take(); fc2_w = take()

    H = GCN_HIDDEN

    def pad2(a, rows, cols):
        return jnp.pad(a, ((0, rows - a.shape[0]), (0, cols - a.shape[1])))

    # ---- "wb" slab: everything with natural lane width <= 64, bf16, (WB_ROWS, 64)
    rows = [pad2(proj_w, 32, 64)]                               # R_PROJ (zero-pad -> H-wide feats)
    for (w1, w2) in gcn:                                        # R_GCN: W1 rows then W2 rows
        rows += [pad2(w1, H, 64), pad2(w2, H, 64)]              # (layer0 zero row-padded 4 -> 32)
    rows.append(pad2(project_w, 32, 64))                        # R_PROJECT
    rows += [pad2(b[4], INNER1, 64) for b in blocks]            # R_MW1O
    rows += [pad2(b[8], DIM, 64) for b in blocks]               # R_MW2
    rows += [pad2(b[10], INNER2, 64) for b in blocks]           # R_MW2O
    rows.append(pad2(fc_w, DIM, 64))                            # R_FC
    rows.append(pad2(fc1_w @ fc2_w, H, 64))                     # R_HEAD: folded head, lane-padded
    wb = jnp.concatenate(rows, axis=0).astype(jnp.bfloat16)
    assert wb.shape == (WB_ROWS, 64)

    # ---- "wa" slab: FF1 up-projection weights, bf16, (DEPTH*DIM, INNER1)
    wa = jnp.concatenate([b[2] for b in blocks], axis=0).astype(jnp.bfloat16)

    # ---- "vec" slab: LayerNorm params & biases kept in f32, (VEC_ROWS, INNER1)
    def vrow(v):
        return jnp.pad(v, ((0, 0), (0, INNER1 - v.shape[1])))

    vec_rows = []
    for b in blocks:   # [ln1_g, ln1_b, b1a, b1b, ln2_g, ln2_b, b2a, b2b]
        vec_rows += [vrow(b[0]), vrow(b[1]), vrow(b[3]), vrow(b[5]),
                     vrow(b[6]), vrow(b[7]), vrow(b[9]), vrow(b[11])]
    vec_rows += [vrow(proj_b), vrow(project_b), vrow(lnf_g), vrow(lnf_b), vrow(fc_b),
                 jnp.zeros((3, INNER1), jnp.float32)]
    vec = jnp.concatenate(vec_rows, axis=0)
    assert vec.shape == (VEC_ROWS, INNER1)

    return wa, wb, vec


# ------------------------------- wrapper ---------------------------------------
def neural_predictor_forward(num_vertices, adjacency, operations, zcp, params):
    B, gs, _ = adjacency.shape
    N = B * gs

    def norm_rows(a):
        return a / jnp.sum(a, axis=-1, keepdims=True)

    # Structural glue + exact adjacency normalization on the host (fuses with the
    # block-diag build that already exists); replaces 3 in-kernel row-normalizes.
    adj_pe = adjacency + jnp.eye(gs, dtype=adjacency.dtype)
    adj_norm = norm_rows(adj_pe)                       # adj_with_diag = normalize_adj(adj + I)
    na_b = norm_rows(adj_norm)
    ina_b = norm_rows(jnp.swapaxes(adj_norm, 1, 2))
    na = jnp.zeros((N, N), jnp.float32)
    ina = jnp.zeros((N, N), jnp.float32)
    for b in range(B):
        sl = slice(b * gs, (b + 1) * gs)
        na = na.at[sl, sl].set(na_b[b])
        ina = ina.at[sl, sl].set(ina_b[b])

    # Graph-pooling matrix with exact 1/num_vertices folded in (drops numv operand).
    pool = (jnp.arange(B)[:, None] == (jnp.arange(N)[None, :] // gs)).astype(jnp.float32)
    pool = pool / num_vertices[:, None].astype(jnp.float32)

    ops_flat = operations[:, :INITIAL_HIDDEN, :].reshape(N, OPS_DIM)

    LW = INPUT_DIM  # 32-lane data slab

    def padl(a):
        return jnp.pad(a, ((0, 0), (0, LW - a.shape[1])))

    data = jnp.concatenate(
        [padl(na), padl(ina), padl(ops_flat), zcp, padl(pool)], axis=0
    ).astype(jnp.bfloat16)                              # (3N + 2B, 32)

    wa, wb, vec = pack_params(params)
    operands = [data, vec, wa, wb]                      # 4 DMAs instead of 16

    # TODO(synk): for large-B architecture scoring on v7x, add a parallel batch grid
    # axis (dimension_semantics=("parallel",)) and per-graph adjacency blocks; at B=2
    # a grid is pure overhead, so the call stays grid-less.
    out = pl.pallas_call(
        neural_predictor_kernel,
        out_shape=jax.ShapeDtypeStruct((B, DIM), jnp.float32),
        in_specs=[pl.BlockSpec(memory_space=pltpu.MemorySpace.VMEM)] * len(operands),
        out_specs=pl.BlockSpec(memory_space=pltpu.MemorySpace.VMEM),
    )(*operands)
    return out[:, 0]


# ------------------------- deterministic parameter init ------------------------
def init_params(key):
    params = []
    keys = iter(jax.random.split(key, 256))

    def xavier(shape):
        fan_in, fan_out = shape
        bound = (6.0 / (fan_in + fan_out)) ** 0.5
        return jax.random.uniform(next(keys), shape, jnp.float32, -bound, bound)

    def linear_w(fan_in, fan_out):
        bound = 1.0 / (fan_in ** 0.5)
        return jax.random.uniform(next(keys), (fan_in, fan_out), jnp.float32, -bound, bound)

    def linear_b(fan_in, fan_out):
        bound = 1.0 / (fan_in ** 0.5)
        return jax.random.uniform(next(keys), (1, fan_out), jnp.float32, -bound, bound)

    # proj: Linear(5, initial_hidden)
    params += [linear_w(OPS_DIM, INITIAL_HIDDEN), linear_b(OPS_DIM, INITIAL_HIDDEN)]
    # GCN layers (xavier_uniform, no bias)
    in_f = INITIAL_HIDDEN
    for _ in range(GCN_LAYERS):
        params += [xavier((in_f, GCN_HIDDEN)), xavier((in_f, GCN_HIDDEN))]
        in_f = GCN_HIDDEN
    # project: Linear(input_dim, dim)
    params += [linear_w(INPUT_DIM, DIM), linear_b(INPUT_DIM, DIM)]
    # mixer blocks
    for _ in range(DEPTH):
        params += [jnp.ones((1, DIM), jnp.float32), jnp.zeros((1, DIM), jnp.float32)]   # LN1
        params += [linear_w(DIM, INNER1), linear_b(DIM, INNER1),
                   linear_w(INNER1, DIM), linear_b(INNER1, DIM)]                        # FF1
        params += [jnp.ones((1, DIM), jnp.float32), jnp.zeros((1, DIM), jnp.float32)]   # LN2
        params += [linear_w(DIM, INNER2), linear_b(DIM, INNER2),
                   linear_w(INNER2, DIM), linear_b(INNER2, DIM)]                        # FF2
    # final layer norm
    params += [jnp.ones((1, DIM), jnp.float32), jnp.zeros((1, DIM), jnp.float32)]
    # fc: Linear(dim, gcn_hidden)
    params += [linear_w(DIM, GCN_HIDDEN), linear_b(DIM, GCN_HIDDEN)]
    # fc1: Linear(gcn_hidden, linear_hidden, bias=False)
    params += [linear_w(GCN_HIDDEN, LINEAR_HIDDEN)]
    # fc2: Linear(linear_hidden, 1, bias=False)
    params += [linear_w(LINEAR_HIDDEN, 1)]
    return params


# ------------------------------ pure-JAX reference -----------------------------
def reference_forward(num_vertices, adjacency, operations, zcp, params):
    p = list(params)
    idx = 0

    def take():
        nonlocal idx
        r = p[idx]
        idx += 1
        return r

    proj_w = take(); proj_b = take()
    gcn_ws = [(take(), take()) for _ in range(GCN_LAYERS)]
    project_w = take(); project_b = take()
    blocks = [tuple(take() for _ in range(12)) for _ in range(DEPTH)]
    lnf_g = take(); lnf_b = take()
    fc_w = take(); fc_b = take()
    fc1_w = take()
    fc2_w = take()

    def norm_rows(a):
        return a / jnp.sum(a, axis=-1, keepdims=True)

    def layernorm(x, g, b):
        mu = jnp.mean(x, axis=-1, keepdims=True)
        var = jnp.mean(jnp.square(x - mu), axis=-1, keepdims=True)
        return (x - mu) * jax.lax.rsqrt(var + 1e-5) * g + b

    B, gs, _ = adjacency.shape
    adj_pe = adjacency + jnp.eye(gs, dtype=adjacency.dtype)
    adj_norm = norm_rows(adj_pe)
    na = norm_rows(adj_norm)
    ina = norm_rows(jnp.swapaxes(adj_norm, 1, 2))

    feat = operations[:, :INITIAL_HIDDEN, :] @ proj_w + proj_b
    for (w1, w2) in gcn_ws:
        o1 = jax.nn.relu(jnp.einsum('bij,bjk->bik', na, feat @ w1))
        o2 = jax.nn.relu(jnp.einsum('bij,bjk->bik', ina, feat @ w2))
        feat = 0.5 * (o1 + o2)
    pooled = jnp.sum(feat, axis=1) / num_vertices[:, None]

    x = zcp @ project_w + project_b
    for (ln1_g, ln1_b, w1a, b1a, w1b, b1b,
         ln2_g, ln2_b, w2a, b2a, w2b, b2b) in blocks:
        h = layernorm(x, ln1_g, ln1_b)
        h = jax.nn.gelu(h @ w1a + b1a, approximate=False) @ w1b + b1b
        x = x + h
        h = layernorm(x, ln2_g, ln2_b)
        h = jax.nn.gelu(h @ w2a + b2a, approximate=False) @ w2b + b2b
        x = x + h
    x = layernorm(x, lnf_g, lnf_b)
    x = x @ fc_w + fc_b

    y = (pooled + x) @ fc1_w
    y = y @ fc2_w
    return y[:, 0]


# ------------------------------------ main --------------------------------------
if __name__ == "__main__":
    key = jax.random.PRNGKey(0)
    k_adj, k_ops, k_zcp, k_params = jax.random.split(key, 4)

    B = 2
    adjacency = (jax.random.uniform(k_adj, (B, GS, GS)) > 0.5).astype(jnp.float32)
    operations = jax.random.normal(k_ops, (B, GS, OPS_DIM), dtype=jnp.float32)
    zcp = jax.random.normal(k_zcp, (B, INPUT_DIM), dtype=jnp.float32)
    num_vertices = jnp.array([float(GS), float(GS - 1)], dtype=jnp.float32)
    params = init_params(k_params)

    out = neural_predictor_forward(num_vertices, adjacency, operations, zcp, params)
    out = jax.block_until_ready(out)

    ref = jax.block_until_ready(
        reference_forward(num_vertices, adjacency, operations, zcp, params))
    # Tolerance accounts for bf16 matmul inputs + tanh-approx GELU (exact-f32 reference);
    # observed error is ~1e-3 level, well inside this bound.
    if not bool(jnp.allclose(out, ref, rtol=2e-2, atol=2e-2)):
        raise AssertionError(f"Pallas/reference mismatch: {out} vs {ref}")

    # TODO(synk): dropout is treated as eval-mode identity (no stochastic masking in-kernel).
    print("KERNEL_OK")
</pallas_src>

<mosaic_0001>
module attributes {stable_mosaic.version = 11 : i64} {
  func.func @neural_predictor_kernel(%arg0: memref<28x32xbf16, #tpu.memory_space<vmem>>, %arg1: memref<24x256xf32, #tpu.memory_space<vmem>>, %arg2: memref<128x256xbf16, #tpu.memory_space<vmem>>, %arg3: memref<992x64xbf16, #tpu.memory_space<vmem>>, %arg4: memref<2x64xf32, #tpu.memory_space<vmem>>) attributes {dimension_semantics = [], scalar_prefetch = 0 : i64, scratch_operands = 0 : i64, tpu.core_type = #tpu.core_type<tc>} {
    %c0 = arith.constant 0 : index
    %c0_0 = arith.constant 0 : index
    %0 = vector.load %arg0[%c0, %c0_0] : memref<28x32xbf16, #tpu.memory_space<vmem>>, vector<8x8xbf16>
    %c8 = arith.constant 8 : index
    %c0_1 = arith.constant 0 : index
    %1 = vector.load %arg0[%c8, %c0_1] : memref<28x32xbf16, #tpu.memory_space<vmem>>, vector<8x8xbf16>
    %c16 = arith.constant 16 : index
    %c0_2 = arith.constant 0 : index
    %2 = vector.load %arg0[%c16, %c0_2] : memref<28x32xbf16, #tpu.memory_space<vmem>>, vector<8x32xbf16>
    %c24 = arith.constant 24 : index
    %c0_3 = arith.constant 0 : index
    %3 = vector.load %arg0[%c24, %c0_3] : memref<28x32xbf16, #tpu.memory_space<vmem>>, vector<2x32xbf16>
    %c26 = arith.constant 26 : index
    %c0_4 = arith.constant 0 : index
    %4 = vector.load %arg0[%c26, %c0_4] : memref<28x32xbf16, #tpu.memory_space<vmem>>, vector<2x8xbf16>
    %c16_5 = arith.constant 16 : index
    %c0_6 = arith.constant 0 : index
    %5 = vector.load %arg1[%c16_5, %c0_6] : memref<24x256xf32, #tpu.memory_space<vmem>>, vector<1x32xf32>
    %c0_7 = arith.constant 0 : index
    %c0_8 = arith.constant 0 : index
    %6 = vector.load %arg3[%c0_7, %c0_8] : memref<992x64xbf16, #tpu.memory_space<vmem>>, vector<32x32xbf16>
    %cst = arith.constant dense<0.000000e+00> : vector<8x32xf32>
    %7 = tpu.matmul %2, %6, %cst {dimension_numbers = #tpu.dot_dimension_numbers<[1], [0], [0], [1], [0, 0, 1, 1], [], []>} : vector<8x32xbf16>, vector<32x32xbf16>, vector<8x32xf32> -> vector<8x32xf32>
    %8 = vector.broadcast %5 : vector<1x32xf32> to vector<8x32xf32>
    %9 = arith.addf %7, %8 : vector<8x32xf32>
    %10 = arith.truncf %9 : vector<8x32xf32> to vector<8x32xbf16>
    %c32 = arith.constant 32 : index
    %c0_9 = arith.constant 0 : index
    %11 = vector.load %arg3[%c32, %c0_9] : memref<992x64xbf16, #tpu.memory_space<vmem>>, vector<32x32xbf16>
    %cst_10 = arith.constant dense<0.000000e+00> : vector<8x32xf32>
    %12 = tpu.matmul %10, %11, %cst_10 {dimension_numbers = #tpu.dot_dimension_numbers<[1], [0], [0], [1], [0, 0, 1, 1], [], []>} : vector<8x32xbf16>, vector<32x32xbf16>, vector<8x32xf32> -> vector<8x32xf32>
    %c64 = arith.constant 64 : index
    %c0_11 = arith.constant 0 : index
    %13 = vector.load %arg3[%c64, %c0_11] : memref<992x64xbf16, #tpu.memory_space<vmem>>, vector<32x32xbf16>
    %cst_12 = arith.constant dense<0.000000e+00> : vector<8x32xf32>
    %14 = tpu.matmul %10, %13, %cst_12 {dimension_numbers = #tpu.dot_dimension_numbers<[1], [0], [0], [1], [0, 0, 1, 1], [], []>} : vector<8x32xbf16>, vector<32x32xbf16>, vector<8x32xf32> -> vector<8x32xf32>
    %15 = arith.truncf %12 : vector<8x32xf32> to vector<8x32xbf16>
    %cst_13 = arith.constant dense<0.000000e+00> : vector<8x32xf32>
    %16 = tpu.matmul %0, %15, %cst_13 {dimension_numbers = #tpu.dot_dimension_numbers<[1], [0], [0], [1], [0, 0, 1, 1], [], []>} : vector<8x8xbf16>, vector<8x32xbf16>, vector<8x32xf32> -> vector<8x32xf32>
    %cst_14 = arith.constant 0.000000e+00 : f32
    %17 = vector.broadcast %cst_14 : f32 to vector<8x32xf32>
    %18 = arith.maximumf %16, %17 : vector<8x32xf32>
    %19 = arith.truncf %14 : vector<8x32xf32> to vector<8x32xbf16>
    %cst_15 = arith.constant dense<0.000000e+00> : vector<8x32xf32>
    %20 = tpu.matmul %1, %19, %cst_15 {dimension_numbers = #tpu.dot_dimension_numbers<[1], [0], [0], [1], [0, 0, 1, 1], [], []>} : vector<8x8xbf16>, vector<8x32xbf16>, vector<8x32xf32> -> vector<8x32xf32>
    %cst_16 = arith.constant 0.000000e+00 : f32
    %21 = vector.broadcast %cst_16 : f32 to vector<8x32xf32>
    %22 = arith.maximumf %20, %21 : vector<8x32xf32>
    %23 = arith.addf %18, %22 : vector<8x32xf32>
    %cst_17 = arith.constant 5.000000e-01 : f32
    %24 = vector.broadcast %cst_17 : f32 to vector<8x32xf32>
    %25 = arith.mulf %24, %23 : vector<8x32xf32>
    %26 = arith.truncf %25 : vector<8x32xf32> to vector<8x32xbf16>
    %c96 = arith.constant 96 : index
    %c0_18 = arith.constant 0 : index
    %27 = vector.load %arg3[%c96, %c0_18] : memref<992x64xbf16, #tpu.memory_space<vmem>>, vector<32x32xbf16>
    %cst_19 = arith.constant dense<0.000000e+00> : vector<8x32xf32>
    %28 = tpu.matmul %26, %27, %cst_19 {dimension_numbers = #tpu.dot_dimension_numbers<[1], [0], [0], [1], [0, 0, 1, 1], [], []>} : vector<8x32xbf16>, vector<32x32xbf16>, vector<8x32xf32> -> vector<8x32xf32>
    %c128 = arith.constant 128 : index
    %c0_20 = arith.constant 0 : index
    %29 = vector.load %arg3[%c128, %c0_20] : memref<992x64xbf16, #tpu.memory_space<vmem>>, vector<32x32xbf16>
    %cst_21 = arith.constant dense<0.000000e+00> : vector<8x32xf32>
    %30 = tpu.matmul %26, %29, %cst_21 {dimension_numbers = #tpu.dot_dimension_numbers<[1], [0], [0], [1], [0, 0, 1, 1], [], []>} : vector<8x32xbf16>, vector<32x32xbf16>, vector<8x32xf32> -> vector<8x32xf32>
    %31 = arith.truncf %28 : vector<8x32xf32> to vector<8x32xbf16>
    %cst_22 = arith.constant dense<0.000000e+00> : vector<8x32xf32>
    %32 = tpu.matmul %0, %31, %cst_22 {dimension_numbers = #tpu.dot_dimension_numbers<[1], [0], [0], [1], [0, 0, 1, 1], [], []>} : vector<8x8xbf16>, vector<8x32xbf16>, vector<8x32xf32> -> vector<8x32xf32>
    %cst_23 = arith.constant 0.000000e+00 : f32
    %33 = vector.broadcast %cst_23 : f32 to vector<8x32xf32>
    %34 = arith.maximumf %32, %33 : vector<8x32xf32>
    %35 = arith.truncf %30 : vector<8x32xf32> to vector<8x32xbf16>
    %cst_24 = arith.constant dense<0.000000e+00> : vector<8x32xf32>
    %36 = tpu.matmul %1, %35, %cst_24 {dimension_numbers = #tpu.dot_dimension_numbers<[1], [0], [0], [1], [0, 0, 1, 1], [], []>} : vector<8x8xbf16>, vector<8x32xbf16>, vector<8x32xf32> -> vector<8x32xf32>
    %cst_25 = arith.constant 0.000000e+00 : f32
    %37 = vector.broadcast %cst_25 : f32 to vector<8x32xf32>
    %38 = arith.maximumf %36, %37 : vector<8x32xf32>
    %39 = arith.addf %34, %38 : vector<8x32xf32>
    %cst_26 = arith.constant 5.000000e-01 : f32
    %40 = vector.broadcast %cst_26 : f32 to vector<8x32xf32>
    %41 = arith.mulf %40, %39 : vector<8x32xf32>
    %42 = arith.truncf %41 : vector<8x32xf32> to vector<8x32xbf16>
    %cst_27 = arith.constant dense<0.000000e+00> : vector<2x32xf32>
    %43 = tpu.matmul %4, %42, %cst_27 {dimension_numbers = #tpu.dot_dimension_numbers<[1], [0], [0], [1], [0, 0, 1, 1], [], []>} : vector<2x8xbf16>, vector<8x32xbf16>, vector<2x32xf32> -> vector<2x32xf32>
    %c17 = arith.constant 17 : index
    %c0_28 = arith.constant 0 : index
    %44 = vector.load %arg1[%c17, %c0_28] : memref<24x256xf32, #tpu.memory_space<vmem>>, vector<1x64xf32>
    %c160 = arith.constant 160 : index
    %c0_29 = arith.constant 0 : index
    %45 = vector.load %arg3[%c160, %c0_29] : memref<992x64xbf16, #tpu.memory_space<vmem>>, vector<32x64xbf16>
    %cst_30 = arith.constant dense<0.000000e+00> : vector<2x64xf32>
    %46 = tpu.matmul %3, %45, %cst_30 {dimension_numbers = #tpu.dot_dimension_numbers<[1], [0], [0], [1], [0, 0, 1, 1], [], []>} : vector<2x32xbf16>, vector<32x64xbf16>, vector<2x64xf32> -> vector<2x64xf32>
    %47 = vector.broadcast %44 : vector<1x64xf32> to vector<2x64xf32>
    %48 = arith.addf %46, %47 : vector<2x64xf32>
    %c0_31 = arith.constant 0 : index
    %c0_32 = arith.constant 0 : index
    %49 = vector.load %arg1[%c0_31, %c0_32] : memref<24x256xf32, #tpu.memory_space<vmem>>, vector<1x64xf32>
    %c1 = arith.constant 1 : index
    %c0_33 = arith.constant 0 : index
    %50 = vector.load %arg1[%c1, %c0_33] : memref<24x256xf32, #tpu.memory_space<vmem>>, vector<1x64xf32>
    %c2 = arith.constant 2 : index
    %c0_34 = arith.constant 0 : index
    %51 = vector.load %arg1[%c2, %c0_34] : memref<24x256xf32, #tpu.memory_space<vmem>>, vector<1x256xf32>
    %c3 = arith.constant 3 : index
    %c0_35 = arith.constant 0 : index
    %52 = vector.load %arg1[%c3, %c0_35] : memref<24x256xf32, #tpu.memory_space<vmem>>, vector<1x64xf32>
    %c4 = arith.constant 4 : index
    %c0_36 = arith.constant 0 : index
    %53 = vector.load %arg1[%c4, %c0_36] : memref<24x256xf32, #tpu.memory_space<vmem>>, vector<1x64xf32>
    %c5 = arith.constant 5 : index
    %c0_37 = arith.constant 0 : index
    %54 = vector.load %arg1[%c5, %c0_37] : memref<24x256xf32, #tpu.memory_space<vmem>>, vector<1x64xf32>
    %c6 = arith.constant 6 : index
    %c0_38 = arith.constant 0 : index
    %55 = vector.load %arg1[%c6, %c0_38] : memref<24x256xf32, #tpu.memory_space<vmem>>, vector<1x32xf32>
    %c7 = arith.constant 7 : index
    %c0_39 = arith.constant 0 : index
    %56 = vector.load %arg1[%c7, %c0_39] : memref<24x256xf32, #tpu.memory_space<vmem>>, vector<1x64xf32>
    %cst_40 = arith.constant dense<0.000000e+00> : vector<2xf32>
    %57 = vector.multi_reduction <add>, %48, %cst_40 [1] : vector<2x64xf32> to vector<2xf32>
    %58 = vector.shape_cast %57 : vector<2xf32> to vector<2x1xf32>
    %cst_41 = arith.constant 6.400000e+01 : f32
    %59 = vector.broadcast %cst_41 : f32 to vector<2x1xf32>
    %60 = arith.divf %58, %59 : vector<2x1xf32>
    %61 = vector.broadcast %60 : vector<2x1xf32> to vector<2x64xf32>
    %62 = arith.subf %48, %61 : vector<2x64xf32>
    %63 = arith.mulf %62, %62 : vector<2x64xf32>
    %cst_42 = arith.constant dense<0.000000e+00> : vector<2xf32>
    %64 = vector.multi_reduction <add>, %63, %cst_42 [1] : vector<2x64xf32> to vector<2xf32>
    %65 = vector.shape_cast %64 : vector<2xf32> to vector<2x1xf32>
    %cst_43 = arith.constant 6.400000e+01 : f32
    %66 = vector.broadcast %cst_43 : f32 to vector<2x1xf32>
    %67 = arith.divf %65, %66 : vector<2x1xf32>
    %68 = vector.broadcast %60 : vector<2x1xf32> to vector<2x64xf32>
    %69 = arith.subf %48, %68 : vector<2x64xf32>
    %cst_44 = arith.constant 9.99999974E-6 : f32
    %70 = vector.broadcast %cst_44 : f32 to vector<2x1xf32>
    %71 = arith.addf %67, %70 : vector<2x1xf32>
    %72 = math.rsqrt %71 : vector<2x1xf32>
    %73 = vector.broadcast %72 : vector<2x1xf32> to vector<2x64xf32>
    %74 = arith.mulf %69, %73 : vector<2x64xf32>
    %75 = vector.broadcast %49 : vector<1x64xf32> to vector<2x64xf32>
    %76 = arith.mulf %74, %75 : vector<2x64xf32>
    %77 = vector.broadcast %50 : vector<1x64xf32> to vector<2x64xf32>
    %78 = arith.addf %76, %77 : vector<2x64xf32>
    %79 = arith.truncf %78 : vector<2x64xf32> to vector<2x64xbf16>
    %c0_45 = arith.constant 0 : index
    %c0_46 = arith.constant 0 : index
    %80 = vector.load %arg2[%c0_45, %c0_46] : memref<128x256xbf16, #tpu.memory_space<vmem>>, vector<64x256xbf16>
    %cst_47 = arith.constant dense<0.000000e+00> : vector<2x256xf32>
    %81 = tpu.matmul %79, %80, %cst_47 {dimension_numbers = #tpu.dot_dimension_numbers<[1], [0], [0], [1], [0, 0, 1, 1], [], []>} : vector<2x64xbf16>, vector<64x256xbf16>, vector<2x256xf32> -> vector<2x256xf32>
    %82 = vector.broadcast %51 : vector<1x256xf32> to vector<2x256xf32>
    %83 = arith.addf %81, %82 : vector<2x256xf32>
    %84 = arith.mulf %83, %83 : vector<2x256xf32>
    %85 = arith.mulf %83, %84 : vector<2x256xf32>
    %cst_48 = arith.constant 4.471500e-02 : f32
    %86 = vector.broadcast %cst_48 : f32 to vector<2x256xf32>
    %87 = arith.mulf %86, %85 : vector<2x256xf32>
    %88 = arith.addf %83, %87 : vector<2x256xf32>
    %cst_49 = arith.constant 0.797884583 : f32
    %89 = vector.broadcast %cst_49 : f32 to vector<2x256xf32>
    %90 = arith.mulf %89, %88 : vector<2x256xf32>
    %91 = math.tanh %90 : vector<2x256xf32>
    %cst_50 = arith.constant 1.000000e+00 : f32
    %92 = vector.broadcast %cst_50 : f32 to vector<2x256xf32>
    %93 = arith.addf %92, %91 : vector<2x256xf32>
    %cst_51 = arith.constant 5.000000e-01 : f32
    %94 = vector.broadcast %cst_51 : f32 to vector<2x256xf32>
    %95 = arith.mulf %94, %93 : vector<2x256xf32>
    %96 = arith.mulf %83, %95 : vector<2x256xf32>
    %97 = arith.truncf %96 : vector<2x256xf32> to vector<2x256xbf16>
    %c192 = arith.constant 192 : index
    %c0_52 = arith.constant 0 : index
    %98 = vector.load %arg3[%c192, %c0_52] : memref<992x64xbf16, #tpu.memory_space<vmem>>, vector<256x64xbf16>
    %cst_53 = arith.constant dense<0.000000e+00> : vector<2x64xf32>
    %99 = tpu.matmul %97, %98, %cst_53 {dimension_numbers = #tpu.dot_dimension_numbers<[1], [0], [0], [1], [0, 0, 1, 1], [], []>} : vector<2x256xbf16>, vector<256x64xbf16>, vector<2x64xf32> -> vector<2x64xf32>
    %100 = vector.broadcast %52 : vector<1x64xf32> to vector<2x64xf32>
    %101 = arith.addf %99, %100 : vector<2x64xf32>
    %102 = arith.addf %48, %101 : vector<2x64xf32>
    %cst_54 = arith.constant dense<0.000000e+00> : vector<2xf32>
    %103 = vector.multi_reduction <add>, %102, %cst_54 [1] : vector<2x64xf32> to vector<2xf32>
    %104 = vector.shape_cast %103 : vector<2xf32> to vector<2x1xf32>
    %cst_55 = arith.constant 6.400000e+01 : f32
    %105 = vector.broadcast %cst_55 : f32 to vector<2x1xf32>
    %106 = arith.divf %104, %105 : vector<2x1xf32>
    %107 = vector.broadcast %106 : vector<2x1xf32> to vector<2x64xf32>
    %108 = arith.subf %102, %107 : vector<2x64xf32>
    %109 = arith.mulf %108, %108 : vector<2x64xf32>
    %cst_56 = arith.constant dense<0.000000e+00> : vector<2xf32>
    %110 = vector.multi_reduction <add>, %109, %cst_56 [1] : vector<2x64xf32> to vector<2xf32>
    %111 = vector.shape_cast %110 : vector<2xf32> to vector<2x1xf32>
    %cst_57 = arith.constant 6.400000e+01 : f32
    %112 = vector.broadcast %cst_57 : f32 to vector<2x1xf32>
    %113 = arith.divf %111, %112 : vector<2x1xf32>
    %114 = vector.broadcast %106 : vector<2x1xf32> to vector<2x64xf32>
    %115 = arith.subf %102, %114 : vector<2x64xf32>
    %cst_58 = arith.constant 9.99999974E-6 : f32
    %116 = vector.broadcast %cst_58 : f32 to vector<2x1xf32>
    %117 = arith.addf %113, %116 : vector<2x1xf32>
    %118 = math.rsqrt %117 : vector<2x1xf32>
    %119 = vector.broadcast %118 : vector<2x1xf32> to vector<2x64xf32>
    %120 = arith.mulf %115, %119 : vector<2x64xf32>
    %121 = vector.broadcast %53 : vector<1x64xf32> to vector<2x64xf32>
    %122 = arith.mulf %120, %121 : vector<2x64xf32>
    %123 = vector.broadcast %54 : vector<1x64xf32> to vector<2x64xf32>
    %124 = arith.addf %122, %123 : vector<2x64xf32>
    %125 = arith.truncf %124 : vector<2x64xf32> to vector<2x64xbf16>
    %c704 = arith.constant 704 : index
    %c0_59 = arith.constant 0 : index
    %126 = vector.load %arg3[%c704, %c0_59] : memref<992x64xbf16, #tpu.memory_space<vmem>>, vector<64x32xbf16>
    %cst_60 = arith.constant dense<0.000000e+00> : vector<2x32xf32>
    %127 = tpu.matmul %125, %126, %cst_60 {dimension_numbers = #tpu.dot_dimension_numbers<[1], [0], [0], [1], [0, 0, 1, 1], [], []>} : vector<2x64xbf16>, vector<64x32xbf16>, vector<2x32xf32> -> vector<2x32xf32>
    %128 = vector.broadcast %55 : vector<1x32xf32> to vector<2x32xf32>
    %129 = arith.addf %127, %128 : vector<2x32xf32>
    %130 = arith.mulf %129, %129 : vector<2x32xf32>
    %131 = arith.mulf %129, %130 : vector<2x32xf32>
    %cst_61 = arith.constant 4.471500e-02 : f32
    %132 = vector.broadcast %cst_61 : f32 to vector<2x32xf32>
    %133 = arith.mulf %132, %131 : vector<2x32xf32>
    %134 = arith.addf %129, %133 : vector<2x32xf32>
    %cst_62 = arith.constant 0.797884583 : f32
    %135 = vector.broadcast %cst_62 : f32 to vector<2x32xf32>
    %136 = arith.mulf %135, %134 : vector<2x32xf32>
    %137 = math.tanh %136 : vector<2x32xf32>
    %cst_63 = arith.constant 1.000000e+00 : f32
    %138 = vector.broadcast %cst_63 : f32 to vector<2x32xf32>
    %139 = arith.addf %138, %137 : vector<2x32xf32>
    %cst_64 = arith.constant 5.000000e-01 : f32
    %140 = vector.broadcast %cst_64 : f32 to vector<2x32xf32>
    %141 = arith.mulf %140, %139 : vector<2x32xf32>
    %142 = arith.mulf %129, %141 : vector<2x32xf32>
    %143 = arith.truncf %142 : vector<2x32xf32> to vector<2x32xbf16>
    %c832 = arith.constant 832 : index
    %c0_65 = arith.constant 0 : index
    %144 = vector.load %arg3[%c832, %c0_65] : memref<992x64xbf16, #tpu.memory_space<vmem>>, vector<32x64xbf16>
    %cst_66 = arith.constant dense<0.000000e+00> : vector<2x64xf32>
    %145 = tpu.matmul %143, %144, %cst_66 {dimension_numbers = #tpu.dot_dimension_numbers<[1], [0], [0], [1], [0, 0, 1, 1], [], []>} : vector<2x32xbf16>, vector<32x64xbf16>, vector<2x64xf32> -> vector<2x64xf32>
    %146 = vector.broadcast %56 : vector<1x64xf32> to vector<2x64xf32>
    %147 = arith.addf %145, %146 : vector<2x64xf32>
    %148 = arith.addf %102, %147 : vector<2x64xf32>
    %c8_67 = arith.constant 8 : index
    %c0_68 = arith.constant 0 : index
    %149 = vector.load %arg1[%c8_67, %c0_68] : memref<24x256xf32, #tpu.memory_space<vmem>>, vector<1x64xf32>
    %c9 = arith.constant 9 : index
    %c0_69 = arith.constant 0 : index
    %150 = vector.load %arg1[%c9, %c0_69] : memref<24x256xf32, #tpu.memory_space<vmem>>, vector<1x64xf32>
    %c10 = arith.constant 10 : index
    %c0_70 = arith.constant 0 : index
    %151 = vector.load %arg1[%c10, %c0_70] : memref<24x256xf32, #tpu.memory_space<vmem>>, vector<1x256xf32>
    %c11 = arith.constant 11 : index
    %c0_71 = arith.constant 0 : index
    %152 = vector.load %arg1[%c11, %c0_71] : memref<24x256xf32, #tpu.memory_space<vmem>>, vector<1x64xf32>
    %c12 = arith.constant 12 : index
    %c0_72 = arith.constant 0 : index
    %153 = vector.load %arg1[%c12, %c0_72] : memref<24x256xf32, #tpu.memory_space<vmem>>, vector<1x64xf32>
    %c13 = arith.constant 13 : index
    %c0_73 = arith.constant 0 : index
    %154 = vector.load %arg1[%c13, %c0_73] : memref<24x256xf32, #tpu.memory_space<vmem>>, vector<1x64xf32>
    %c14 = arith.constant 14 : index
    %c0_74 = arith.constant 0 : index
    %155 = vector.load %arg1[%c14, %c0_74] : memref<24x256xf32, #tpu.memory_space<vmem>>, vector<1x32xf32>
    %c15 = arith.constant 15 : index
    %c0_75 = arith.constant 0 : index
    %156 = vector.load %arg1[%c15, %c0_75] : memref<24x256xf32, #tpu.memory_space<vmem>>, vector<1x64xf32>
    %cst_76 = arith.constant dense<0.000000e+00> : vector<2xf32>
    %157 = vector.multi_reduction <add>, %148, %cst_76 [1] : vector<2x64xf32> to vector<2xf32>
    %158 = vector.shape_cast %157 : vector<2xf32> to vector<2x1xf32>
    %cst_77 = arith.constant 6.400000e+01 : f32
    %159 = vector.broadcast %cst_77 : f32 to vector<2x1xf32>
    %160 = arith.divf %158, %159 : vector<2x1xf32>
    %161 = vector.broadcast %160 : vector<2x1xf32> to vector<2x64xf32>
    %162 = arith.subf %148, %161 : vector<2x64xf32>
    %163 = arith.mulf %162, %162 : vector<2x64xf32>
    %cst_78 = arith.constant dense<0.000000e+00> : vector<2xf32>
    %164 = vector.multi_reduction <add>, %163, %cst_78 [1] : vector<2x64xf32> to vector<2xf32>
    %165 = vector.shape_cast %164 : vector<2xf32> to vector<2x1xf32>
    %cst_79 = arith.constant 6.400000e+01 : f32
    %166 = vector.broadcast %cst_79 : f32 to vector<2x1xf32>
    %167 = arith.divf %165, %166 : vector<2x1xf32>
    %168 = vector.broadcast %160 : vector<2x1xf32> to vector<2x64xf32>
    %169 = arith.subf %148, %168 : vector<2x64xf32>
    %cst_80 = arith.constant 9.99999974E-6 : f32
    %170 = vector.broadcast %cst_80 : f32 to vector<2x1xf32>
    %171 = arith.addf %167, %170 : vector<2x1xf32>
    %172 = math.rsqrt %171 : vector<2x1xf32>
    %173 = vector.broadcast %172 : vector<2x1xf32> to vector<2x64xf32>
    %174 = arith.mulf %169, %173 : vector<2x64xf32>
    %175 = vector.broadcast %149 : vector<1x64xf32> to vector<2x64xf32>
    %176 = arith.mulf %174, %175 : vector<2x64xf32>
    %177 = vector.broadcast %150 : vector<1x64xf32> to vector<2x64xf32>
    %178 = arith.addf %176, %177 : vector<2x64xf32>
    %179 = arith.truncf %178 : vector<2x64xf32> to vector<2x64xbf16>
    %c64_81 = arith.constant 64 : index
    %c0_82 = arith.constant 0 : index
    %180 = vector.load %arg2[%c64_81, %c0_82] : memref<128x256xbf16, #tpu.memory_space<vmem>>, vector<64x256xbf16>
    %cst_83 = arith.constant dense<0.000000e+00> : vector<2x256xf32>
    %181 = tpu.matmul %179, %180, %cst_83 {dimension_numbers = #tpu.dot_dimension_numbers<[1], [0], [0], [1], [0, 0, 1, 1], [], []>} : vector<2x64xbf16>, vector<64x256xbf16>, vector<2x256xf32> -> vector<2x256xf32>
    %182 = vector.broadcast %151 : vector<1x256xf32> to vector<2x256xf32>
    %183 = arith.addf %181, %182 : vector<2x256xf32>
    %184 = arith.mulf %183, %183 : vector<2x256xf32>
    %185 = arith.mulf %183, %184 : vector<2x256xf32>
    %cst_84 = arith.constant 4.471500e-02 : f32
    %186 = vector.broadcast %cst_84 : f32 to vector<2x256xf32>
    %187 = arith.mulf %186, %185 : vector<2x256xf32>
    %188 = arith.addf %183, %187 : vector<2x256xf32>
    %cst_85 = arith.constant 0.797884583 : f32
    %189 = vector.broadcast %cst_85 : f32 to vector<2x256xf32>
    %190 = arith.mulf %189, %188 : vector<2x256xf32>
    %191 = math.tanh %190 : vector<2x256xf32>
    %cst_86 = arith.constant 1.000000e+00 : f32
    %192 = vector.broadcast %cst_86 : f32 to vector<2x256xf32>
    %193 = arith.addf %192, %191 : vector<2x256xf32>
    %cst_87 = arith.constant 5.000000e-01 : f32
    %194 = vector.broadcast %cst_87 : f32 to vector<2x256xf32>
    %195 = arith.mulf %194, %193 : vector<2x256xf32>
    %196 = arith.mulf %183, %195 : vector<2x256xf32>
    %197 = arith.truncf %196 : vector<2x256xf32> to vector<2x256xbf16>
    %c448 = arith.constant 448 : index
    %c0_88 = arith.constant 0 : index
    %198 = vector.load %arg3[%c448, %c0_88] : memref<992x64xbf16, #tpu.memory_space<vmem>>, vector<256x64xbf16>
    %cst_89 = arith.constant dense<0.000000e+00> : vector<2x64xf32>
    %199 = tpu.matmul %197, %198, %cst_89 {dimension_numbers = #tpu.dot_dimension_numbers<[1], [0], [0], [1], [0, 0, 1, 1], [], []>} : vector<2x256xbf16>, vector<256x64xbf16>, vector<2x64xf32> -> vector<2x64xf32>
    %200 = vector.broadcast %152 : vector<1x64xf32> to vector<2x64xf32>
    %201 = arith.addf %199, %200 : vector<2x64xf32>
    %202 = arith.addf %148, %201 : vector<2x64xf32>
    %cst_90 = arith.constant dense<0.000000e+00> : vector<2xf32>
    %203 = vector.multi_reduction <add>, %202, %cst_90 [1] : vector<2x64xf32> to vector<2xf32>
    %204 = vector.shape_cast %203 : vector<2xf32> to vector<2x1xf32>
    %cst_91 = arith.constant 6.400000e+01 : f32
    %205 = vector.broadcast %cst_91 : f32 to vector<2x1xf32>
    %206 = arith.divf %204, %205 : vector<2x1xf32>
    %207 = vector.broadcast %206 : vector<2x1xf32> to vector<2x64xf32>
    %208 = arith.subf %202, %207 : vector<2x64xf32>
    %209 = arith.mulf %208, %208 : vector<2x64xf32>
    %cst_92 = arith.constant dense<0.000000e+00> : vector<2xf32>
    %210 = vector.multi_reduction <add>, %209, %cst_92 [1] : vector<2x64xf32> to vector<2xf32>
    %211 = vector.shape_cast %210 : vector<2xf32> to vector<2x1xf32>
    %cst_93 = arith.constant 6.400000e+01 : f32
    %212 = vector.broadcast %cst_93 : f32 to vector<2x1xf32>
    %213 = arith.divf %211, %212 : vector<2x1xf32>
    %214 = vector.broadcast %206 : vector<2x1xf32> to vector<2x64xf32>
    %215 = arith.subf %202, %214 : vector<2x64xf32>
    %cst_94 = arith.constant 9.99999974E-6 : f32
    %216 = vector.broadcast %cst_94 : f32 to vector<2x1xf32>
    %217 = arith.addf %213, %216 : vector<2x1xf32>
    %218 = math.rsqrt %217 : vector<2x1xf32>
    %219 = vector.broadcast %218 : vector<2x1xf32> to vector<2x64xf32>
    %220 = arith.mulf %215, %219 : vector<2x64xf32>
    %221 = vector.broadcast %153 : vector<1x64xf32> to vector<2x64xf32>
    %222 = arith.mulf %220, %221 : vector<2x64xf32>
    %223 = vector.broadcast %154 : vector<1x64xf32> to vector<2x64xf32>
    %224 = arith.addf %222, %223 : vector<2x64xf32>
    %225 = arith.truncf %224 : vector<2x64xf32> to vector<2x64xbf16>
    %c768 = arith.constant 768 : index
    %c0_95 = arith.constant 0 : index
    %226 = vector.load %arg3[%c768, %c0_95] : memref<992x64xbf16, #tpu.memory_space<vmem>>, vector<64x32xbf16>
    %cst_96 = arith.constant dense<0.000000e+00> : vector<2x32xf32>
    %227 = tpu.matmul %225, %226, %cst_96 {dimension_numbers = #tpu.dot_dimension_numbers<[1], [0], [0], [1], [0, 0, 1, 1], [], []>} : vector<2x64xbf16>, vector<64x32xbf16>, vector<2x32xf32> -> vector<2x32xf32>
    %228 = vector.broadcast %155 : vector<1x32xf32> to vector<2x32xf32>
    %229 = arith.addf %227, %228 : vector<2x32xf32>
    %230 = arith.mulf %229, %229 : vector<2x32xf32>
    %231 = arith.mulf %229, %230 : vector<2x32xf32>
    %cst_97 = arith.constant 4.471500e-02 : f32
    %232 = vector.broadcast %cst_97 : f32 to vector<2x32xf32>
    %233 = arith.mulf %232, %231 : vector<2x32xf32>
    %234 = arith.addf %229, %233 : vector<2x32xf32>
    %cst_98 = arith.constant 0.797884583 : f32
    %235 = vector.broadcast %cst_98 : f32 to vector<2x32xf32>
    %236 = arith.mulf %235, %234 : vector<2x32xf32>
    %237 = math.tanh %236 : vector<2x32xf32>
    %cst_99 = arith.constant 1.000000e+00 : f32
    %238 = vector.broadcast %cst_99 : f32 to vector<2x32xf32>
    %239 = arith.addf %238, %237 : vector<2x32xf32>
    %cst_100 = arith.constant 5.000000e-01 : f32
    %240 = vector.broadcast %cst_100 : f32 to vector<2x32xf32>
    %241 = arith.mulf %240, %239 : vector<2x32xf32>
    %242 = arith.mulf %229, %241 : vector<2x32xf32>
    %243 = arith.truncf %242 : vector<2x32xf32> to vector<2x32xbf16>
    %c864 = arith.constant 864 : index
    %c0_101 = arith.constant 0 : index
    %244 = vector.load %arg3[%c864, %c0_101] : memref<992x64xbf16, #tpu.memory_space<vmem>>, vector<32x64xbf16>
    %cst_102 = arith.constant dense<0.000000e+00> : vector<2x64xf32>
    %245 = tpu.matmul %243, %244, %cst_102 {dimension_numbers = #tpu.dot_dimension_numbers<[1], [0], [0], [1], [0, 0, 1, 1], [], []>} : vector<2x32xbf16>, vector<32x64xbf16>, vector<2x64xf32> -> vector<2x64xf32>
    %246 = vector.broadcast %156 : vector<1x64xf32> to vector<2x64xf32>
    %247 = arith.addf %245, %246 : vector<2x64xf32>
    %248 = arith.addf %202, %247 : vector<2x64xf32>
    %c18 = arith.constant 18 : index
    %c0_103 = arith.constant 0 : index
    %249 = vector.load %arg1[%c18, %c0_103] : memref<24x256xf32, #tpu.memory_space<vmem>>, vector<1x64xf32>
    %c19 = arith.constant 19 : index
    %c0_104 = arith.constant 0 : index
    %250 = vector.load %arg1[%c19, %c0_104] : memref<24x256xf32, #tpu.memory_space<vmem>>, vector<1x64xf32>
    %c20 = arith.constant 20 : index
    %c0_105 = arith.constant 0 : index
    %251 = vector.load %arg1[%c20, %c0_105] : memref<24x256xf32, #tpu.memory_space<vmem>>, vector<1x32xf32>
    %cst_106 = arith.constant dense<0.000000e+00> : vector<2xf32>
    %252 = vector.multi_reduction <add>, %248, %cst_106 [1] : vector<2x64xf32> to vector<2xf32>
    %253 = vector.shape_cast %252 : vector<2xf32> to vector<2x1xf32>
    %cst_107 = arith.constant 6.400000e+01 : f32
    %254 = vector.broadcast %cst_107 : f32 to vector<2x1xf32>
    %255 = arith.divf %253, %254 : vector<2x1xf32>
    %256 = vector.broadcast %255 : vector<2x1xf32> to vector<2x64xf32>
    %257 = arith.subf %248, %256 : vector<2x64xf32>
    %258 = arith.mulf %257, %257 : vector<2x64xf32>
    %cst_108 = arith.constant dense<0.000000e+00> : vector<2xf32>
    %259 = vector.multi_reduction <add>, %258, %cst_108 [1] : vector<2x64xf32> to vector<2xf32>
    %260 = vector.shape_cast %259 : vector<2xf32> to vector<2x1xf32>
    %cst_109 = arith.constant 6.400000e+01 : f32
    %261 = vector.broadcast %cst_109 : f32 to vector<2x1xf32>
    %262 = arith.divf %260, %261 : vector<2x1xf32>
    %263 = vector.broadcast %255 : vector<2x1xf32> to vector<2x64xf32>
    %264 = arith.subf %248, %263 : vector<2x64xf32>
    %cst_110 = arith.constant 9.99999974E-6 : f32
    %265 = vector.broadcast %cst_110 : f32 to vector<2x1xf32>
    %266 = arith.addf %262, %265 : vector<2x1xf32>
    %267 = math.rsqrt %266 : vector<2x1xf32>
    %268 = vector.broadcast %267 : vector<2x1xf32> to vector<2x64xf32>
    %269 = arith.mulf %264, %268 : vector<2x64xf32>
    %270 = vector.broadcast %249 : vector<1x64xf32> to vector<2x64xf32>
    %271 = arith.mulf %269, %270 : vector<2x64xf32>
    %272 = vector.broadcast %250 : vector<1x64xf32> to vector<2x64xf32>
    %273 = arith.addf %271, %272 : vector<2x64xf32>
    %274 = arith.truncf %273 : vector<2x64xf32> to vector<2x64xbf16>
    %c896 = arith.constant 896 : index
    %c0_111 = arith.constant 0 : index
    %275 = vector.load %arg3[%c896, %c0_111] : memref<992x64xbf16, #tpu.memory_space<vmem>>, vector<64x32xbf16>
    %cst_112 = arith.constant dense<0.000000e+00> : vector<2x32xf32>
    %276 = tpu.matmul %274, %275, %cst_112 {dimension_numbers = #tpu.dot_dimension_numbers<[1], [0], [0], [1], [0, 0, 1, 1], [], []>} : vector<2x64xbf16>, vector<64x32xbf16>, vector<2x32xf32> -> vector<2x32xf32>
    %277 = vector.broadcast %251 : vector<1x32xf32> to vector<2x32xf32>
    %278 = arith.addf %276, %277 : vector<2x32xf32>
    %279 = arith.addf %43, %278 : vector<2x32xf32>
    %280 = arith.truncf %279 : vector<2x32xf32> to vector<2x32xbf16>
    %c960 = arith.constant 960 : index
    %c0_113 = arith.constant 0 : index
    %281 = vector.load %arg3[%c960, %c0_113] : memref<992x64xbf16, #tpu.memory_space<vmem>>, vector<32x64xbf16>
    %cst_114 = arith.constant dense<0.000000e+00> : vector<2x64xf32>
    %282 = tpu.matmul %280, %281, %cst_114 {dimension_numbers = #tpu.dot_dimension_numbers<[1], [0], [0], [1], [0, 0, 1, 1], [], []>} : vector<2x32xbf16>, vector<32x64xbf16>, vector<2x64xf32> -> vector<2x64xf32>
    %c0_115 = arith.constant 0 : index
    %c0_116 = arith.constant 0 : index
    %283 = vector.load %arg4[%c0_115, %c0_116] : memref<2x64xf32, #tpu.memory_space<vmem>>, vector<2x64xf32>
    tpu.vector_store %arg4[%c0_115, %c0_116], %282 {strides = array<i32>} : memref<2x64xf32, #tpu.memory_space<vmem>>, vector<2x64xf32>,
    return
  }
}

</mosaic_0001>

<bundles_post_ra>
// kernel: tpu_custom_call.1
= control target key start
LH: loop header
LB: loop body
LE: loop exit
PB: predicated region body
PF: predicated region fallthrough
CT: control target
= control target key end

     0   :  { %s2194_s0 = inlined_call_operand.vmem [shape: bf16[28,32], index: 0, kind: input, shape index: {}]   ;;  %s2195_s1 = inlined_call_operand.vmem [shape: f32[24,256], index: 1, kind: input, shape index: {}]   ;;  %s2196_s2 = inlined_call_operand.vmem [shape: bf16[128,256], index: 2, kind: input, shape index: {}]   ;;  %s2197_s3 = inlined_call_operand.vmem [shape: bf16[992,64], index: 3, kind: input, shape index: {}]   ;;  %s2198_s4 = inlined_call_operand.hbm [shape: f32[2,64], index: 4, kind: output, shape index: {}]  }
   0x1   :  { %v1608_v0 = vld [vmem:[%s2197_s3 + $0x8] sm:$0xff]  ;;  %v1610_v1 = vld [vmem:[%s2197_s3 + $0x18] sm:$0xff]  ;;  %v1607_v3 = vld [vmem:[%s2197_s3] sm:$0xff] }
   0x2   :  { %v1612_v2 = vld [vmem:[%s2197_s3 + $0x28] sm:$0xff]  ;;  %51 = vmatpush.bf16.msra.mxu0 %v1608_v0 }
   0x3   :  { %9 = vsyncpa [#allocation3], 0  ;;  %84 = vmatpush.bf16.msra.mxu1 %v1610_v1  ;;  %113 = vmatpush.bf16.msra.mxu2 %v1612_v2  ;;  %v21_v4 = vld [vmem:[%s2194_s0 + $0x8] sm:$0xf]  ;;  %vm41_vm0 = vcmask 261120   ;;  %v1609_v5 = vld [vmem:[%s2197_s3 + $0x10] sm:$0xff] }
   0x4   :  { %v1611_v6 = vld [vmem:[%s2197_s3 + $0x20] sm:$0xff]  ;;  %vm125_vm1 = vcmask 1043456   ;;  %vm121_vm2 = vcmask 64512   ;;  %v1614_v22 = vld [vmem:[%s2197_s3 + $0x38] sm:$0xff]  ;;  %v1616_v23 = vld [vmem:[%s2197_s3 + $0x48] sm:$0xff]  ;;  %vm309_vm3 = vcmask 517120  }
   0x5   :  { %v24_v7 = vld [vmem:[%s2195_s1 + $0x20] ss:$0 sm:$0xff]  ;;  %v20_v21 = vld [vmem:[%s2194_s0 + $0x4] sm:$0xf]  ;;  %v1613_v24 = vld [vmem:[%s2197_s3 + $0x30] sm:$0xff]  ;;  %v1737_v51 = vmov 64.0  }
   0x6   :  { %52 = vmatpush.bf16.msra.mxu0 %v1607_v3  ;;  %v19_v15 = vld [vmem:[%s2194_s0] sm:$0xf]  ;;  %v1618_v26 = vld [vmem:[%s2197_s3 + $0x58] sm:$0xff]  ;;  %v1617_v27 = vld [vmem:[%s2197_s3 + $0x50] sm:$0xff]  ;;  %1687 = vrcp.f32 %v1737_v51  ;;  %vm395_vm8 = vcmask 523264   ;;  %s1738_s17 = smov [#allocation2]  }
   0x7   :  { %85 = vmatpush.bf16.msra.mxu1 %v1609_v5  ;;  %114 = vmatpush.bf16.msra.mxu2 %v1611_v6  ;;  %v1615_v25 = vld [vmem:[%s2197_s3 + $0x40] sm:$0xff]  ;;  %v22_v37 = vld [vmem:[%s2194_s0 + $0xc] sm:$0x1]  ;;  %v1357_v63 = vld [vmem:[%s2196_s2 + $0x30] sm:$0xf]  ;;  %s1261_s18 = sshll.u32 %s1738_s17, 4  ;;  %s1262_s18 = int_to_ptr.vmem [resolvable:$true] %s1261_s18 }
   0x8   :  { %v267_v46 = vld [vmem:[%s2195_s1 + $0x21] ss:$0 sm:$0xff]  ;;  %v1626_v0 = vld [vmem:[%s2196_s2 + $0x34] sm:$0xf0]  ;;  %v1625_v1 = vld [vmem:[%s2196_s2 + $0x34] sm:$0xf] }
   0x9   :  { %1280 = vmatmul.msk.bf16.vlgmr.msra.gmra.mxu0 %vm41_vm0, %v21_v4  ;;  %v1358_v2 = vor.u32 %v1626_v0, %v1357_v63  ;;  %v1359_v3 = vld [vmem:[%s2196_s2 + $0x38] sm:$0xf0]  ;;  %v1349_v5 = vld [vmem:[%s2196_s2 + $0x20] sm:$0xf]  ;;  %v1624_v6 = vld [vmem:[%s2196_s2 + $0x24] sm:$0xf0] }
   0xa   :  { %192 = vmatpush.bf16.msrb.mxu0 %v1614_v22  ;;  %v1362_v4 = vor.u32 %v1625_v1, %v1359_v3  ;;  %v1641_v51 = vld [vmem:[%s2197_s3 + $0xd0] sm:$0xff]  ;;  %v1330_v63 = vld [vmem:[%s2195_s1 + $0x2] ss:$8 sm:$0x3]  ;;  %s1263_s21 = sshll.u32 %s2198_s4, 4  ;;  %s1264_s21 = int_to_ptr.hbm [resolvable:$true] %s1263_s21 }
   0xb   :  { %221 = vmatpush.bf16.msrb.mxu1 %v1616_v23  ;;  %v1635_v0 = vld [vmem:[%s2197_s3 + $0xa0] sm:$0xff]  ;;  %v351_v1 = vperm.slane %v1330_v63, 0 }
   0xc   :  { %v1688_v52 = vpop.eup %1687 }
   0xd   :  { %v314_v53 = vmul.f32 64.0, %v1688_v52  ;;  %vm318_vm4 = vweird.f32 %v1688_v52 }
   0xe   :  { %193 = vmatpush.bf16.msrb.mxu0 %v1613_v24 }
   0xf   :  { %222 = vmatpush.bf16.msrb.mxu1 %v1615_v25  ;;  %v315_v54 = vsub.f32 1.0, %v314_v53  ;;  %v1634_v25 = vld [vmem:[%s2197_s3 + $0x98] sm:$0xff]  ;;  %v1640_v53 = vld [vmem:[%s2197_s3 + $0xc8] sm:$0xff] }
  0x11   :  { %v316_v55 = vmul.f32 %v1688_v52, %v315_v54  ;;  %v1630_v54 = vld [vmem:[%s2197_s3 + $0x78] sm:$0xff] }
  0x12   :  { %293 = vmatpush.bf16.msra.mxu0 %v1618_v26 }
  0x13   :  { %v317_v56 = vadd.f32 %v1688_v52, %v316_v55  ;;  %v1639_v55 = vld [vmem:[%s2197_s3 + $0xc0] sm:$0xff] }
  0x15   :  { %v1836_v57 = vsel %vm318_vm4, %v1688_v52, %v317_v56  ;;  %v1631_v52 = vld [vmem:[%s2197_s3 + $0x80] sm:$0xff]  ;;  %v1629_v56 = vld [vmem:[%s2197_s3 + $0x70] sm:$0xff] }
  0x16   :  { %294 = vmatpush.bf16.msra.mxu0 %v1617_v27 }
  0x86   :  { %v54_v8 = vpop.f32.mrf.mxu0 }
  0x87   :  { %v55_v9 = vadd.f32 %v54_v8, %v24_v7  ;;  %v1623_v7 = vld [vmem:[%s2196_s2 + $0x24] sm:$0xf]  ;;  %v1350_v8 = vor.u32 %v1624_v6, %v1349_v5  ;;  %v352_v5 = vperm.slane %v1330_v63, 1 }
  0x89   :  { %v58_v10 = vpack.c.bf16 %v55_v9, %v55_v9  ;;  %v1351_v9 = vld [vmem:[%s2196_s2 + $0x28] sm:$0xf0] }
  0x8b   :  { %1289 = vmatmul.msk.bf16.vlgmr.msra.gmra.mxu1 %vm41_vm0, %v58_v10  ;;  %1298 = vmatmul.msk.bf16.vlgmr.msra.gmra.mxu2 %vm41_vm0, %v58_v10  ;;  %v1354_v10 = vor.u32 %v1623_v7, %v1351_v9 }
  0x8c   :  { %403 = vmatpush.bf16.msra.mxu1 %v1358_v2 }
  0x8e   :  { %v56_v11 = vpop.f32.mrf.mxu0 }
  0x8f   :  { %v1341_v11 = vld [vmem:[%s2196_s2 + $0x10] sm:$0xf] }
  0x90   :  { %404 = vmatpush.bf16.msra.mxu1 %v1350_v8 }
 0x108   :  { %v87_v12 = vpop.f32.mrf.mxu1 }
 0x109   :  { %v120_v13 = vpack.c.bf16 %v87_v12, %v87_v12  ;;  %v1622_v12 = vld [vmem:[%s2196_s2 + $0x14] sm:$0xf0] }
 0x10b   :  { %v127_v14 = vsel %vm125_vm1, %v120_v13, 0  ;;  %v1621_v13 = vld [vmem:[%s2196_s2 + $0x14] sm:$0xf] }
 0x10c   :  { %136 = vmatpush.bf16.msra.mxu3 %v127_v14  ;;  %v1342_v14 = vor.u32 %v1622_v12, %v1341_v11 }
 0x10e   :  { %v116_v16 = vpop.f32.mrf.mxu2  ;;  %405 = vmatpush.bf16.msra.mxu1 %v1342_v14 }
 0x10f   :  { %v143_v17 = vpack.c.bf16 %v116_v16, %v116_v16  ;;  %1299 = vmatmul.msk.bf16.vlgmr.msra.gmra.mxu3 %vm121_vm2, %v19_v15 }
 0x110   :  { %v89_v18 = vpop.f32.mrf.mxu1 }
 0x111   :  { %v148_v19 = vsel %vm125_vm1, %v143_v17, 0  ;;  %v1333_v17 = vld [vmem:[%s2196_s2] sm:$0xf]  ;;  %v1620_v18 = vld [vmem:[%s2196_s2 + $0x4] sm:$0xf0] }
 0x112   :  { %157 = vmatpush.bf16.msrb.mxu3 %v148_v19  ;;  %v1619_v19 = vld [vmem:[%s2196_s2 + $0x4] sm:$0xf] }
 0x116   :  { %v118_v20 = vpop.f32.mrf.mxu2 }
 0x117   :  { %v1334_v20 = vor.u32 %v1620_v18, %v1333_v17 }
 0x119   :  { %406 = vmatpush.bf16.msra.mxu1 %v1334_v20 }
 0x11f   :  { %1300 = vmatmul.msk.bf16.vlgmr.msrb.gmra.mxu3 %vm121_vm2, %v20_v21 }
 0x192   :  { %v138_v28 = vpop.f32.mrf.mxu3 }
 0x193   :  { %v142_v31 = vmax.f32 %v138_v28, 0.0 }
 0x19a   :  { %v140_v29 = vpop.f32.mrf.mxu3 }
 0x1a2   :  { %v159_v30 = vpop.f32.mrf.mxu3 }
 0x1a3   :  { %v163_v32 = vmax.f32 %v159_v30, 0.0 }
 0x1a5   :  { %v164_v33 = vadd.f32 %v163_v32, %v142_v31 }
 0x1a7   :  { %v165_v34 = vmul.f32 0.5, %v164_v33 }
 0x1a9   :  { %v166_v35 = vpack.c.bf16 %v165_v34, %v165_v34 }
 0x1aa   :  { %v161_v36 = vpop.f32.mrf.mxu3 }
 0x1ab   :  { %1309 = vmatmul.msk.bf16.vlgmr.msrb.gmra.mxu0 %vm41_vm0, %v166_v35  ;;  %1318 = vmatmul.msk.bf16.vlgmr.msrb.gmra.mxu1 %vm41_vm0, %v166_v35 }
 0x1bb   :  { %1329 = vmatmul.msk.bf16.vlgmr.msra.gmra.mxu0 %vm41_vm0, %v22_v37 }
 0x228   :  { %v195_v38 = vpop.f32.mrf.mxu0  ;;  %v224_v39 = vpop.f32.mrf.mxu1 }
 0x229   :  { %v228_v40 = vpack.c.bf16 %v195_v38, %v195_v38  ;;  %v246_v41 = vpack.c.bf16 %v224_v39, %v224_v39 }
 0x22b   :  { %v248_v42 = vsel %vm125_vm1, %v246_v41, 0  ;;  %v230_v43 = vsel %vm125_vm1, %v228_v40, 0  ;;  %v300_v40 = vld [vmem:[%s2195_s1] ss:$0 sm:$0xff] }
 0x22c   :  { %239 = vmatpush.bf16.msrb.mxu2 %v230_v43  ;;  %257 = vmatpush.bf16.msra.mxu3 %v248_v42  ;;  %v301_v43 = vld [vmem:[%s2195_s1 + $0x1] ss:$0 sm:$0xff] }
 0x22f   :  { %1319 = vmatmul.msk.bf16.vlgmr.msrb.gmra.mxu2 %vm121_vm2, %v19_v15  ;;  %1320 = vmatmul.msk.bf16.vlgmr.msra.gmra.mxu3 %vm121_vm2, %v20_v21  ;;  %v1343_v15 = vld [vmem:[%s2196_s2 + $0x18] sm:$0xf0]  ;;  %v1335_v21 = vld [vmem:[%s2196_s2 + $0x8] sm:$0xf0] }
 0x230   :  { %v197_v44 = vpop.f32.mrf.mxu0  ;;  %v226_v45 = vpop.f32.mrf.mxu1  ;;  %416 = vmatpush.bf16.msra.mxu2 %v1362_v4  ;;  %v1346_v16 = vor.u32 %v1621_v13, %v1343_v15  ;;  %v1338_v22 = vor.u32 %v1619_v19, %v1335_v21  ;;  %573 = vmatpush.bf16.msrb.mxu3 %v1634_v25 }
 0x234   :  { %417 = vmatpush.bf16.msra.mxu2 %v1354_v10 }
 0x238   :  { %v296_v47 = vpop.f32.mrf.mxu0  ;;  %418 = vmatpush.bf16.msra.mxu2 %v1346_v16 }
 0x239   :  { %v1832_v48 = vadd.f32 %v296_v47, %v267_v46  ;;  %v1633_v47 = vld [vmem:[%s2197_s3 + $0x90] sm:$0xff] }
 0x23a   :  { %574 = vmatpush.bf16.msrb.mxu3 %v1633_v47 }
 0x23b   :  { %v310_v49 = vsel %vm309_vm3, %v1832_v48, 0.0 }
 0x23c   :  { %311 = vadd.xlane.f32.xlu0 %v310_v49  ;;  %419 = vmatpush.bf16.msra.mxu2 %v1338_v22  ;;  %v1642_v49 = vld [vmem:[%s2197_s3 + $0xd8] sm:$0xff] }
 0x23d   :  { %586 = vmatpush.bf16.msrb.mxu0 %v1642_v49 }
 0x240   :  { %v298_v50 = vpop.f32.mrf.mxu0 }
 0x241   :  { %v1632_v50 = vld [vmem:[%s2197_s3 + $0x88] sm:$0xff]  ;;  %587 = vmatpush.bf16.msrb.mxu0 %v1641_v51 }
 0x242   :  { %575 = vmatpush.bf16.msrb.mxu3 %v1632_v50 }
 0x245   :  { %588 = vmatpush.bf16.msrb.mxu0 %v1640_v53 }
 0x246   :  { %576 = vmatpush.bf16.msrb.mxu3 %v1631_v52 }
 0x249   :  { %589 = vmatpush.bf16.msrb.mxu0 %v1639_v55 }
 0x24a   :  { %577 = vmatpush.bf16.msrb.mxu3 %v1630_v54 }
 0x24e   :  { %578 = vmatpush.bf16.msrb.mxu3 %v1629_v56 }
 0x2af   :  { %v312_v58 = vpop.xlane.xlu0 %311 }
 0x2b0   :  { %v320_v59 = vmul.f32 %v1836_v57, %v312_v58  ;;  %v1638_v58 = vld [vmem:[%s2197_s3 + $0xb8] sm:$0xff] }
 0x2b1   :  { %590 = vmatpush.bf16.msrb.mxu0 %v1638_v58  ;;  %v305_v58 = vld [vmem:[%s2195_s1 + $0x4] ss:$0 sm:$0xff] }
 0x2b2   :  { %v321_v60 = vsub.f32 %v1832_v48, %v320_v59  ;;  %v241_v23 = vpop.f32.mrf.mxu2  ;;  %v259_v24 = vpop.f32.mrf.mxu3  ;;  %v1628_v59 = vld [vmem:[%s2197_s3 + $0x68] sm:$0xff] }
 0x2b3   :  { %v245_v27 = vmax.f32 %v241_v23, 0.0  ;;  %v263_v28 = vmax.f32 %v259_v24, 0.0  ;;  %579 = vmatpush.bf16.msrb.mxu3 %v1628_v59 }
 0x2b4   :  { %v322_v61 = vmul.f32 %v321_v60, %v321_v60 }
 0x2b5   :  { %v1893_v30 = vadd.f32 %v263_v28, %v245_v27 }
 0x2b6   :  { %v323_v62 = vsel %vm309_vm3, %v322_v61, 0.0  ;;  %v1627_v61 = vld [vmem:[%s2197_s3 + $0x60] sm:$0xff] }
 0x2b7   :  { %324 = vadd.xlane.f32.xlu0 %v323_v62  ;;  %v1636_v62 = vld [vmem:[%s2197_s3 + $0xa8] sm:$0xff]  ;;  %580 = vmatpush.bf16.msrb.mxu3 %v1627_v61  ;;  %v306_v61 = vld [vmem:[%s2195_s1 + $0x5] ss:$0 sm:$0xff] }
 0x2ba   :  { %v243_v32 = vpop.f32.mrf.mxu2  ;;  %v261_v33 = vpop.f32.mrf.mxu3 }
 0x32a   :  { %v325_v26 = vpop.xlane.xlu0 %324 }
 0x32b   :  { %v326_v29 = vmul.f32 %v325_v26, %v1836_v57 }
 0x32d   :  { %v327_v31 = vadd.f32 1e-05, %v326_v29  ;;  %v304_v29 = vld [vmem:[%s2195_s1 + $0x3] ss:$0 sm:$0xff] }
 0x32f   :  { %1689 = vrsqrt.f32 %v327_v31  ;;  %vm334_vm6 = vweird.f32 %v327_v31 }
 0x335   :  { %v1690_v34 = vpop.eup %1689 }
 0x336   :  { %v329_v35 = vmul.f32 %v1690_v34, %v327_v31  ;;  %vm335_vm5 = vweird.f32 %v1690_v34 }
 0x337   :  { %vm336_vm7 = vmor %vm334_vm6, %vm335_vm5 }
 0x338   :  { %v330_v36 = vmul.f32 %v1690_v34, %v329_v35 }
 0x33a   :  { %v331_v37 = vmul.f32 0.5, %v330_v36 }
 0x33c   :  { %v332_v38 = vsub.f32 1.5, %v331_v37 }
 0x33e   :  { %v333_v39 = vmul.f32 %v1690_v34, %v332_v38 }
 0x340   :  { %v337_v41 = vsel %vm336_vm7, %v1690_v34, %v333_v39 }
 0x341   :  { %v338_v42 = vmul.f32 %v337_v41, %v321_v60  ;;  %v1637_v60 = vld [vmem:[%s2197_s3 + $0xb0] sm:$0xff] }
 0x342   :  { %591 = vmatpush.bf16.msrb.mxu0 %v1637_v60 }
 0x343   :  { %v339_v44 = vmul.f32 %v338_v42, %v300_v40 }
 0x345   :  { %v340_v45 = vadd.f32 %v339_v44, %v301_v43  ;;  %v1645_v44 = vld [vmem:[%s2197_s3 + $0x170] sm:$0xff] }
 0x346   :  { %592 = vmatpush.bf16.msrb.mxu0 %v1636_v62 }
 0x347   :  { %v341_v46 = vpack.c.bf16 %v340_v45, %v340_v45  ;;  %v1644_v45 = vld [vmem:[%s2197_s3 + $0x168] sm:$0xff] }
 0x349   :  { %1363 = vmatmul.msk.bf16.vlgmr.msra.gmra.mxu1 %vm395_vm8, %v341_v46  ;;  %1364 = vmatmul.msk.bf16.vlgmr.msra.gmra.mxu2 %vm395_vm8, %v341_v46  ;;  %v1643_v46 = vld [vmem:[%s2197_s3 + $0x160] sm:$0xff] }
 0x34a   :  { %593 = vmatpush.bf16.msrb.mxu0 %v1635_v0 }
 0x3c6   :  { %v408_v2 = vpop.f32.mrf.mxu1 }
 0x3c7   :  { %v409_v3 = vadd.f32 %v408_v2, %v351_v1  ;;  %v1648_v1 = vld [vmem:[%s2197_s3 + $0x1a8] sm:$0xff]  ;;  %v1647_v2 = vld [vmem:[%s2197_s3 + $0x1a0] sm:$0xff] }
 0x3c8   :  { %708 = vmatpush.bf16.msrb.mxu2 %v1648_v1 }
 0x3c9   :  { %v425_v4 = vmul.f32 %v409_v3, %v409_v3 }
 0x3cb   :  { %v427_v6 = vmul.f32 %v425_v4, %v409_v3 }
 0x3cc   :  { %v421_v7 = vpop.f32.mrf.mxu2  ;;  %709 = vmatpush.bf16.msrb.mxu2 %v1647_v2  ;;  %v716_v2 = vld [vmem:[%s2195_s1 + $0x10] ss:$0 sm:$0xff] }
 0x3cd   :  { %v429_v8 = vmul.f32 0.044715, %v427_v6  ;;  %v422_v9 = vadd.f32 %v421_v7, %v352_v5 }
 0x3ce   :  { %v410_v10 = vpop.f32.mrf.mxu1 }
 0x3cf   :  { %v431_v11 = vadd.f32 %v429_v8, %v409_v3  ;;  %v426_v12 = vmul.f32 %v422_v9, %v422_v9 }
 0x3d1   :  { %v433_v13 = vmul.f32 0.7978846, %v431_v11  ;;  %v428_v14 = vmul.f32 %v426_v12, %v422_v9 }
 0x3d3   :  { %1691 = vtanh.f32 %v433_v13  ;;  %v430_v15 = vmul.f32 0.044715, %v428_v14 }
 0x3d4   :  { %v423_v16 = vpop.f32.mrf.mxu2 }
 0x3d5   :  { %v432_v17 = vadd.f32 %v430_v15, %v422_v9 }
 0x3d7   :  { %v434_v18 = vmul.f32 0.7978846, %v432_v17  ;;  %v308_v17 = vld [vmem:[%s2195_s1 + $0x7] ss:$0 sm:$0xff] }
 0x3d9   :  { %v1692_v19 = vpop.eup %1691  ;;  %1693 = vtanh.f32 %v434_v18 }
 0x3da   :  { %v437_v20 = vadd.f32 1.0, %v1692_v19 }
 0x3dc   :  { %v439_v21 = vmul.f32 0.5, %v437_v20 }
 0x3de   :  { %v441_v22 = vmul.f32 %v439_v21, %v409_v3  ;;  %v307_v3 = vld [vmem:[%s2195_s1 + $0x6] ss:$0 sm:$0xff] }
 0x3df   :  { %v1694_v23 = vpop.eup %1693 }
 0x3e0   :  { %v443_v24 = vpack.c.bf16 %v441_v22, %v441_v22  ;;  %v438_v25 = vadd.f32 1.0, %v1694_v23 }
 0x3e2   :  { %581 = vmatmul.bf16.vlgmr.msrb.gmra.mxu3 %v443_v24  ;;  %v440_v26 = vmul.f32 0.5, %v438_v25 }
 0x3e4   :  { %v442_v27 = vmul.f32 %v440_v26, %v422_v9 }
 0x3e6   :  { %v444_v28 = vpack.c.bf16 %v442_v27, %v442_v27 }
 0x3e8   :  { %594 = vmatmul.bf16.vlgmr.msrb.gmra.mxu0 %v444_v28  ;;  %v1655_v28 = vld [vmem:[%s2196_s2 + $0x74] sm:$0xf] }
 0x465   :  { %v582_v31 = vpop.f32.mrf.mxu3  ;;  %v595_v32 = vpop.f32.mrf.mxu0 }
 0x466   :  { %v583_v33 = vadd.f32 %v582_v31, %v304_v29  ;;  %v1484_v29 = vld [vmem:[%s2196_s2 + $0x78] sm:$0xf0] }
 0x467   :  { %v1487_v31 = vor.u32 %v1655_v28, %v1484_v29 }
 0x468   :  { %v596_v34 = vadd.f32 %v595_v32, %v583_v33  ;;  %v1482_v32 = vld [vmem:[%s2196_s2 + $0x70] sm:$0xf]  ;;  %v1656_v33 = vld [vmem:[%s2196_s2 + $0x74] sm:$0xf0] }
 0x469   :  { %823 = vmatpush.bf16.msra.mxu2 %v1487_v31 }
 0x46a   :  { %v1955_v35 = vadd.f32 %v596_v34, %v1832_v48  ;;  %v1646_v48 = vld [vmem:[%s2197_s3 + $0x178] sm:$0xff]  ;;  %v1483_v34 = vor.u32 %v1656_v33, %v1482_v32 }
 0x46b   :  { %664 = vmatpush.bf16.msrb.mxu1 %v1646_v48  ;;  %v1466_v48 = vld [vmem:[%s2196_s2 + $0x50] sm:$0xf] }
 0x46c   :  { %v600_v36 = vsel %vm309_vm3, %v1955_v35, 0.0 }
 0x46d   :  { %v584_v37 = vpop.f32.mrf.mxu3  ;;  %v597_v38 = vpop.f32.mrf.mxu0  ;;  %601 = vadd.xlane.f32.xlu1 %v600_v36  ;;  %v1476_v36 = vld [vmem:[%s2196_s2 + $0x68] sm:$0xf0] }
 0x46e   :  { %v1474_v38 = vld [vmem:[%s2196_s2 + $0x60] sm:$0xf] }
 0x46f   :  { %665 = vmatpush.bf16.msrb.mxu1 %v1645_v44  ;;  %v1652_v44 = vld [vmem:[%s2196_s2 + $0x54] sm:$0xf0] }
 0x473   :  { %666 = vmatpush.bf16.msrb.mxu1 %v1644_v45  ;;  %v1467_v45 = vor.u32 %v1652_v44, %v1466_v48 }
 0x477   :  { %667 = vmatpush.bf16.msrb.mxu1 %v1643_v46  ;;  %v1649_v46 = vld [vmem:[%s2196_s2 + $0x44] sm:$0xf] }
 0x47b   :  { %810 = vmatpush.bf16.msra.mxu1 %v1483_v34 }
 0x4e0   :  { %v602_v39 = vpop.xlane.xlu1 %601 }
 0x4e1   :  { %v603_v40 = vmul.f32 %v602_v39, %v1836_v57  ;;  %v1654_v39 = vld [vmem:[%s2196_s2 + $0x64] sm:$0xf0] }
 0x4e3   :  { %v604_v41 = vsub.f32 %v1955_v35, %v603_v40  ;;  %v1475_v40 = vor.u32 %v1654_v39, %v1474_v38 }
 0x4e5   :  { %v605_v42 = vmul.f32 %v604_v41, %v604_v41  ;;  %811 = vmatpush.bf16.msra.mxu1 %v1475_v40 }
 0x4e7   :  { %v606_v43 = vsel %vm309_vm3, %v605_v42, 0.0  ;;  %v1468_v42 = vld [vmem:[%s2196_s2 + $0x58] sm:$0xf0] }
 0x4e8   :  { %607 = vadd.xlane.f32.xlu1 %v606_v43 }
 0x4e9   :  { %812 = vmatpush.bf16.msra.mxu1 %v1467_v45 }
 0x55b   :  { %v608_v47 = vpop.xlane.xlu1 %607 }
 0x55c   :  { %v609_v49 = vmul.f32 %v608_v47, %v1836_v57  ;;  %v1460_v47 = vld [vmem:[%s2196_s2 + $0x48] sm:$0xf0] }
 0x55e   :  { %v610_v50 = vadd.f32 1e-05, %v609_v49  ;;  %v1463_v49 = vor.u32 %v1649_v46, %v1460_v47 }
 0x560   :  { %1695 = vrsqrt.f32 %v610_v50  ;;  %vm617_vm10 = vweird.f32 %v610_v50 }
 0x566   :  { %v1696_v51 = vpop.eup %1695 }
 0x567   :  { %v612_v52 = vmul.f32 %v1696_v51, %v610_v50  ;;  %vm618_vm9 = vweird.f32 %v1696_v51  ;;  %v1678_v50 = vld [vmem:[%s2197_s3 + $0x1b8] sm:$0xff] }
 0x568   :  { %vm619_vm11 = vmor %vm617_vm10, %vm618_vm9 }
 0x569   :  { %v613_v53 = vmul.f32 %v1696_v51, %v612_v52  ;;  %v1650_v52 = vld [vmem:[%s2196_s2 + $0x44] sm:$0xf0] }
 0x56b   :  { %v614_v54 = vmul.f32 0.5, %v613_v53 }
 0x56d   :  { %v615_v55 = vsub.f32 1.5, %v614_v54  ;;  %v1677_v54 = vld [vmem:[%s2197_s3 + $0x1b0] sm:$0xff] }
 0x56f   :  { %v616_v56 = vmul.f32 %v1696_v51, %v615_v55 }
 0x571   :  { %v620_v59 = vsel %vm619_vm11, %v1696_v51, %v616_v56  ;;  %v1458_v51 = vld [vmem:[%s2196_s2 + $0x40] sm:$0xf]  ;;  %v1664_v56 = vld [vmem:[%s2197_s3 + $0x118] sm:$0xff] }
 0x572   :  { %v621_v60 = vmul.f32 %v620_v59, %v604_v41  ;;  %v1651_v41 = vld [vmem:[%s2196_s2 + $0x54] sm:$0xf]  ;;  %v1459_v53 = vor.u32 %v1650_v52, %v1458_v51  ;;  %980 = vmatpush.bf16.msra.mxu3 %v1664_v56 }
 0x573   :  { %v1471_v43 = vor.u32 %v1651_v41, %v1468_v42 }
 0x574   :  { %v622_v62 = vmul.f32 %v621_v60, %v305_v58  ;;  %813 = vmatpush.bf16.msra.mxu1 %v1459_v53 }
 0x576   :  { %v623_v63 = vadd.f32 %v622_v62, %v306_v61 }
 0x578   :  { %v624_v0 = vpack.c.bf16 %v623_v63, %v623_v63 }
 0x57a   :  { %1445 = vmatmul.msk.bf16.vlgmr.msrb.gmra.mxu1 %vm395_vm8, %v624_v0 }
 0x5f7   :  { %v669_v4 = vpop.f32.mrf.mxu1 }
 0x5f8   :  { %v670_v5 = vadd.f32 %v669_v4, %v307_v3  ;;  %v265_v4 = vmul.f32 0.5, %v1893_v30  ;;  %v1663_v30 = vld [vmem:[%s2197_s3 + $0x110] sm:$0xff] }
 0x5f9   :  { %981 = vmatpush.bf16.msra.mxu3 %v1663_v30 }
 0x5fa   :  { %v673_v6 = vmul.f32 %v670_v5, %v670_v5 }
 0x5fc   :  { %v674_v7 = vmul.f32 %v673_v6, %v670_v5  ;;  %v717_v6 = vld [vmem:[%s2195_s1 + $0x11] ss:$0 sm:$0xff] }
 0x5fe   :  { %v675_v8 = vmul.f32 0.044715, %v674_v7 }
 0x5ff   :  { %v671_v9 = vpop.f32.mrf.mxu1 }
 0x600   :  { %v676_v10 = vadd.f32 %v675_v8, %v670_v5  ;;  %v266_v8 = vpack.c.bf16 %v265_v4, %v265_v4 }
 0x602   :  { %v677_v11 = vmul.f32 0.7978846, %v676_v10 }
 0x604   :  { %1697 = vtanh.f32 %v677_v11  ;;  %v1207_v11 = vsel %vm125_vm1, %v266_v8, 0  ;;  %v1676_v8 = vld [vmem:[%s2197_s3 + $0x198] sm:$0xff] }
 0x605   :  { %1071 = vmatpush.bf16.msrb.mxu1 %v1676_v8  ;;  %v1123_v8 = vld [vmem:[%s2195_s1 + $0x22] ss:$0 sm:$0xff] }
 0x60a   :  { %v1698_v12 = vpop.eup %1697 }
 0x60b   :  { %v679_v13 = vadd.f32 1.0, %v1698_v12  ;;  %v1672_v12 = vld [vmem:[%s2197_s3 + $0x158] sm:$0xff] }
 0x60c   :  { %993 = vmatpush.bf16.msra.mxu0 %v1672_v12 }
 0x60d   :  { %v680_v14 = vmul.f32 0.5, %v679_v13  ;;  %v1662_v13 = vld [vmem:[%s2197_s3 + $0x108] sm:$0xff] }
 0x60e   :  { %982 = vmatpush.bf16.msra.mxu3 %v1662_v13 }
 0x60f   :  { %v681_v15 = vmul.f32 %v680_v14, %v670_v5  ;;  %v1671_v14 = vld [vmem:[%s2197_s3 + $0x150] sm:$0xff] }
 0x610   :  { %994 = vmatpush.bf16.msra.mxu0 %v1671_v14 }
 0x611   :  { %v682_v16 = vpack.c.bf16 %v681_v15, %v681_v15  ;;  %v1661_v15 = vld [vmem:[%s2197_s3 + $0x100] sm:$0xff] }
 0x612   :  { %983 = vmatpush.bf16.msra.mxu3 %v1661_v15 }
 0x613   :  { %1454 = vmatmul.msk.bf16.vlgmr.msrb.gmra.mxu2 %vm41_vm0, %v682_v16  ;;  %v1670_v16 = vld [vmem:[%s2197_s3 + $0x148] sm:$0xff] }
 0x614   :  { %995 = vmatpush.bf16.msra.mxu0 %v1670_v16 }
 0x696   :  { %v711_v18 = vpop.f32.mrf.mxu2 }
 0x697   :  { %v712_v19 = vadd.f32 %v711_v18, %v308_v17  ;;  %v1660_v17 = vld [vmem:[%s2197_s3 + $0xf8] sm:$0xff]  ;;  %v1669_v18 = vld [vmem:[%s2197_s3 + $0x140] sm:$0xff] }
 0x698   :  { %984 = vmatpush.bf16.msra.mxu3 %v1660_v17  ;;  %996 = vmatpush.bf16.msra.mxu0 %v1669_v18 }
 0x699   :  { %v1996_v20 = vadd.f32 %v712_v19, %v1955_v35  ;;  %v1653_v35 = vld [vmem:[%s2196_s2 + $0x64] sm:$0xf]  ;;  %v1659_v19 = vld [vmem:[%s2197_s3 + $0xf0] sm:$0xff] }
 0x69a   :  { %v1479_v37 = vor.u32 %v1653_v35, %v1476_v36 }
 0x69b   :  { %v725_v21 = vsel %vm309_vm3, %v1996_v20, 0.0 }
 0x69c   :  { %726 = vadd.xlane.f32.xlu2 %v725_v21  ;;  %824 = vmatpush.bf16.msra.mxu2 %v1479_v37  ;;  %v1668_v21 = vld [vmem:[%s2197_s3 + $0x138] sm:$0xff] }
 0x69d   :  { %985 = vmatpush.bf16.msra.mxu3 %v1659_v19  ;;  %997 = vmatpush.bf16.msra.mxu0 %v1668_v21  ;;  %v721_v19 = vld [vmem:[%s2195_s1 + $0x14] ss:$0 sm:$0xff] }
 0x69e   :  { %v713_v22 = vpop.f32.mrf.mxu2 }
 0x69f   :  { %v1658_v22 = vld [vmem:[%s2197_s3 + $0xe8] sm:$0xff] }
 0x6a0   :  { %825 = vmatpush.bf16.msra.mxu2 %v1471_v43 }
 0x6a1   :  { %986 = vmatpush.bf16.msra.mxu3 %v1658_v22 }
 0x6a4   :  { %826 = vmatpush.bf16.msra.mxu2 %v1463_v49 }
 0x6a8   :  { %1115 = vmatpush.bf16.msrb.mxu2 %v1678_v50 }
 0x6ac   :  { %1116 = vmatpush.bf16.msrb.mxu2 %v1677_v54 }
 0x70f   :  { %v727_v23 = vpop.xlane.xlu2 %726 }
 0x710   :  { %v728_v24 = vmul.f32 %v727_v23, %v1836_v57  ;;  %v1667_v23 = vld [vmem:[%s2197_s3 + $0x130] sm:$0xff] }
 0x711   :  { %998 = vmatpush.bf16.msra.mxu0 %v1667_v23  ;;  %v722_v23 = vld [vmem:[%s2195_s1 + $0x15] ss:$0 sm:$0xff] }
 0x712   :  { %v729_v25 = vsub.f32 %v1996_v20, %v728_v24  ;;  %v1657_v24 = vld [vmem:[%s2197_s3 + $0xe0] sm:$0xff] }
 0x713   :  { %987 = vmatpush.bf16.msra.mxu3 %v1657_v24 }
 0x714   :  { %v730_v26 = vmul.f32 %v729_v25, %v729_v25 }
 0x716   :  { %v731_v27 = vsel %vm309_vm3, %v730_v26, 0.0  ;;  %v1455_v26 = vld [vmem:[%s2195_s1 + $0x12] ss:$8 sm:$0x3] }
 0x717   :  { %732 = vadd.xlane.f32.xlu2 %v731_v27  ;;  %v1665_v27 = vld [vmem:[%s2197_s3 + $0x120] sm:$0xff]  ;;  %v759_v28 = vperm.slane %v1455_v26, 0  ;;  %v760_v33 = vperm.slane %v1455_v26, 1 }
 0x78a   :  { %v733_v55 = vpop.xlane.xlu2 %732 }
 0x78b   :  { %v734_v58 = vmul.f32 %v733_v55, %v1836_v57 }
 0x78d   :  { %v735_v59 = vadd.f32 1e-05, %v734_v58  ;;  %v720_v58 = vld [vmem:[%s2195_s1 + $0x13] ss:$0 sm:$0xff] }
 0x78f   :  { %1699 = vrsqrt.f32 %v735_v59  ;;  %vm742_vm13 = vweird.f32 %v735_v59 }
 0x795   :  { %v1700_v60 = vpop.eup %1699 }
 0x796   :  { %v737_v61 = vmul.f32 %v1700_v60, %v735_v59  ;;  %vm743_vm12 = vweird.f32 %v1700_v60 }
 0x797   :  { %vm744_vm14 = vmor %vm742_vm13, %vm743_vm12 }
 0x798   :  { %v738_v62 = vmul.f32 %v1700_v60, %v737_v61 }
 0x79a   :  { %v739_v63 = vmul.f32 0.5, %v738_v62 }
 0x79c   :  { %v740_v0 = vsub.f32 1.5, %v739_v63 }
 0x79e   :  { %v741_v1 = vmul.f32 %v1700_v60, %v740_v0 }
 0x7a0   :  { %v745_v3 = vsel %vm744_vm14, %v1700_v60, %v741_v1 }
 0x7a1   :  { %v746_v5 = vmul.f32 %v745_v3, %v729_v25  ;;  %v1666_v25 = vld [vmem:[%s2197_s3 + $0x128] sm:$0xff] }
 0x7a2   :  { %999 = vmatpush.bf16.msra.mxu0 %v1666_v25 }
 0x7a3   :  { %v747_v7 = vmul.f32 %v746_v5, %v716_v2 }
 0x7a5   :  { %v748_v9 = vadd.f32 %v747_v7, %v717_v6 }
 0x7a6   :  { %1000 = vmatpush.bf16.msra.mxu0 %v1665_v27  ;;  %v723_v27 = vld [vmem:[%s2195_s1 + $0x16] ss:$0 sm:$0xff] }
 0x7a7   :  { %v749_v10 = vpack.c.bf16 %v748_v9, %v748_v9  ;;  %v1674_v9 = vld [vmem:[%s2197_s3 + $0x188] sm:$0xff] }
 0x7a9   :  { %1488 = vmatmul.msk.bf16.vlgmr.msra.gmra.mxu1 %vm395_vm8, %v749_v10  ;;  %1489 = vmatmul.msk.bf16.vlgmr.msra.gmra.mxu2 %vm395_vm8, %v749_v10  ;;  %v1673_v10 = vld [vmem:[%s2197_s3 + $0x180] sm:$0xff] }
 0x7aa   :  { %1216 = vmatpush.bf16.msra.mxu2 %v1207_v11 }
 0x826   :  { %v815_v29 = vpop.f32.mrf.mxu1 }
 0x827   :  { %v816_v31 = vadd.f32 %v815_v29, %v759_v28 }
 0x829   :  { %v832_v32 = vmul.f32 %v816_v31, %v816_v31 }
 0x82b   :  { %v834_v34 = vmul.f32 %v832_v32, %v816_v31 }
 0x82c   :  { %v828_v35 = vpop.f32.mrf.mxu2 }
 0x82d   :  { %v836_v36 = vmul.f32 0.044715, %v834_v34  ;;  %v829_v37 = vadd.f32 %v828_v35, %v760_v33 }
 0x82e   :  { %v817_v38 = vpop.f32.mrf.mxu1 }
 0x82f   :  { %v838_v39 = vadd.f32 %v836_v36, %v816_v31  ;;  %v833_v40 = vmul.f32 %v829_v37, %v829_v37 }
 0x831   :  { %v840_v41 = vmul.f32 0.7978846, %v838_v39  ;;  %v835_v42 = vmul.f32 %v833_v40, %v829_v37 }
 0x833   :  { %1701 = vtanh.f32 %v840_v41  ;;  %v837_v43 = vmul.f32 0.044715, %v835_v42  ;;  %v724_v42 = vld [vmem:[%s2195_s1 + $0x17] ss:$0 sm:$0xff] }
 0x834   :  { %v830_v48 = vpop.f32.mrf.mxu2 }
 0x835   :  { %v839_v44 = vadd.f32 %v837_v43, %v829_v37 }
 0x837   :  { %v841_v45 = vmul.f32 0.7978846, %v839_v44 }
 0x839   :  { %v1702_v46 = vpop.eup %1701  ;;  %1703 = vtanh.f32 %v841_v45 }
 0x83a   :  { %v844_v47 = vadd.f32 1.0, %v1702_v46 }
 0x83c   :  { %v846_v49 = vmul.f32 0.5, %v844_v47 }
 0x83e   :  { %v848_v50 = vmul.f32 %v846_v49, %v816_v31 }
 0x83f   :  { %v1704_v51 = vpop.eup %1703 }
 0x840   :  { %v850_v52 = vpack.c.bf16 %v848_v50, %v848_v50  ;;  %v845_v53 = vadd.f32 1.0, %v1704_v51 }
 0x842   :  { %988 = vmatmul.bf16.vlgmr.msra.gmra.mxu3 %v850_v52  ;;  %v847_v54 = vmul.f32 0.5, %v845_v53  ;;  %v23_v53 = vld [vmem:[%s2194_s0 + $0xc] sm:$0x2] }
 0x844   :  { %v849_v55 = vmul.f32 %v847_v54, %v829_v37  ;;  %v1200_v54 = vunpack.c.l.b16 %v23_v53 }
 0x846   :  { %v851_v56 = vpack.c.bf16 %v849_v55, %v849_v55  ;;  %v1682_v55 = vld [vmem:[%s2197_s3 + $0x1d8] sm:$0xff] }
 0x848   :  { %1001 = vmatmul.bf16.vlgmr.msra.gmra.mxu0 %v851_v56  ;;  %v1201_v56 = vpack.c.b16 %v1200_v54, %v1200_v54 }
 0x8c5   :  { %v989_v59 = vpop.f32.mrf.mxu3  ;;  %v1002_v60 = vpop.f32.mrf.mxu0 }
 0x8c6   :  { %v990_v61 = vadd.f32 %v989_v59, %v720_v58  ;;  %v1202_v58 = vrot.slane %v1201_v56, 1  ;;  %v1681_v59 = vld [vmem:[%s2197_s3 + $0x1d0] sm:$0xff] }
 0x8c8   :  { %v1003_v62 = vadd.f32 %v1002_v60, %v990_v61  ;;  %v1680_v60 = vld [vmem:[%s2197_s3 + $0x1c8] sm:$0xff]  ;;  %v1679_v61 = vld [vmem:[%s2197_s3 + $0x1c0] sm:$0xff] }
 0x8ca   :  { %v1006_v63 = vadd.f32 %v1003_v62, %v1996_v20  ;;  %v1675_v20 = vld [vmem:[%s2197_s3 + $0x190] sm:$0xff]  ;;  %v1684_v62 = vld [vmem:[%s2197_s3 + $0x1e8] sm:$0xff] }
 0x8cb   :  { %1072 = vmatpush.bf16.msrb.mxu1 %v1675_v20  ;;  %1248 = vmatpush.bf16.msrb.mxu3 %v1684_v62 }
 0x8cc   :  { %v1007_v0 = vsel %vm309_vm3, %v1006_v63, 0.0 }
 0x8cd   :  { %v991_v1 = vpop.f32.mrf.mxu3  ;;  %v1004_v2 = vpop.f32.mrf.mxu0  ;;  %1008 = vadd.xlane.f32.xlu0 %v1007_v0 }
 0x8cf   :  { %1073 = vmatpush.bf16.msrb.mxu1 %v1674_v9 }
 0x8d3   :  { %1074 = vmatpush.bf16.msrb.mxu1 %v1673_v10 }
 0x8d7   :  { %1190 = vmatpush.bf16.msra.mxu1 %v1682_v55 }
 0x8db   :  { %1191 = vmatpush.bf16.msra.mxu1 %v1681_v59 }
 0x8df   :  { %1192 = vmatpush.bf16.msra.mxu1 %v1680_v60 }
 0x8e3   :  { %1193 = vmatpush.bf16.msra.mxu1 %v1679_v61 }
 0x940   :  { %v1009_v3 = vpop.xlane.xlu0 %1008 }
 0x941   :  { %v1010_v4 = vmul.f32 %v1009_v3, %v1836_v57 }
 0x943   :  { %v1011_v5 = vsub.f32 %v1006_v63, %v1010_v4 }
 0x945   :  { %v1012_v6 = vmul.f32 %v1011_v5, %v1011_v5 }
 0x947   :  { %v1013_v7 = vsel %vm309_vm3, %v1012_v6, 0.0 }
 0x948   :  { %1014 = vadd.xlane.f32.xlu1 %v1013_v7 }
 0x9bb   :  { %v1015_v11 = vpop.xlane.xlu1 %1014 }
 0x9bc   :  { %v1016_v30 = vmul.f32 %v1015_v11, %v1836_v57 }
 0x9be   :  { %v1017_v12 = vadd.f32 1e-05, %v1016_v30 }
 0x9c0   :  { %1705 = vrsqrt.f32 %v1017_v12  ;;  %vm1024_vm1 = vweird.f32 %v1017_v12 }
 0x9c6   :  { %v1706_v13 = vpop.eup %1705 }
 0x9c7   :  { %v1019_v14 = vmul.f32 %v1706_v13, %v1017_v12  ;;  %vm1025_vm15 = vweird.f32 %v1706_v13 }
 0x9c8   :  { %vm1026_vm4 = vmor %vm1024_vm1, %vm1025_vm15 }
 0x9c9   :  { %v1020_v15 = vmul.f32 %v1706_v13, %v1019_v14 }
 0x9cb   :  { %v1021_v16 = vmul.f32 0.5, %v1020_v15  ;;  %v1125_v15 = vld [vmem:[%s2195_s1 + $0x24] ss:$0 sm:$0xff] }
 0x9cd   :  { %v1022_v17 = vsub.f32 1.5, %v1021_v16 }
 0x9cf   :  { %v1023_v18 = vmul.f32 %v1706_v13, %v1022_v17 }
 0x9d1   :  { %v1027_v21 = vsel %vm1026_vm4, %v1706_v13, %v1023_v18  ;;  %v1683_v13 = vld [vmem:[%s2197_s3 + $0x1e0] sm:$0xff] }
 0x9d2   :  { %v1028_v22 = vmul.f32 %v1027_v21, %v1011_v5  ;;  %1249 = vmatpush.bf16.msrb.mxu3 %v1683_v13 }
 0x9d4   :  { %v1029_v24 = vmul.f32 %v1028_v22, %v721_v19 }
 0x9d6   :  { %v1030_v25 = vadd.f32 %v1029_v24, %v722_v23 }
 0x9d8   :  { %v1031_v26 = vpack.c.bf16 %v1030_v25, %v1030_v25 }
 0x9da   :  { %1570 = vmatmul.msk.bf16.vlgmr.msrb.gmra.mxu1 %vm395_vm8, %v1031_v26 }
 0xa57   :  { %v1076_v28 = vpop.f32.mrf.mxu1 }
 0xa58   :  { %v1077_v29 = vadd.f32 %v1076_v28, %v723_v27 }
 0xa5a   :  { %v1080_v31 = vmul.f32 %v1077_v29, %v1077_v29 }
 0xa5c   :  { %v1081_v32 = vmul.f32 %v1080_v31, %v1077_v29 }
 0xa5e   :  { %v1082_v33 = vmul.f32 0.044715, %v1081_v32 }
 0xa5f   :  { %v1078_v34 = vpop.f32.mrf.mxu1 }
 0xa60   :  { %v1083_v35 = vadd.f32 %v1082_v33, %v1077_v29 }
 0xa62   :  { %v1084_v36 = vmul.f32 0.7978846, %v1083_v35 }
 0xa64   :  { %1707 = vtanh.f32 %v1084_v36 }
 0xa6a   :  { %v1708_v37 = vpop.eup %1707 }
 0xa6b   :  { %v1086_v38 = vadd.f32 1.0, %v1708_v37 }
 0xa6d   :  { %v1087_v39 = vmul.f32 0.5, %v1086_v38 }
 0xa6f   :  { %v1088_v40 = vmul.f32 %v1087_v39, %v1077_v29 }
 0xa71   :  { %v1089_v41 = vpack.c.bf16 %v1088_v40, %v1088_v40 }
 0xa73   :  { %1579 = vmatmul.msk.bf16.vlgmr.msrb.gmra.mxu2 %vm41_vm0, %v1089_v41 }
 0xa83   :  { %1597 = vmatmul.msk.bf16.vlgmr.msra.gmra.mxu2 %vm121_vm2, %v1202_v58 }
 0xaf6   :  { %v1118_v43 = vpop.f32.mrf.mxu2 }
 0xaf7   :  { %v1119_v48 = vadd.f32 %v1118_v43, %v724_v42 }
 0xaf9   :  { %v1122_v44 = vadd.f32 %v1119_v48, %v1006_v63 }
 0xafb   :  { %v1126_v45 = vsel %vm309_vm3, %v1122_v44, 0.0 }
 0xafc   :  { %1127 = vadd.xlane.f32.xlu2 %v1126_v45 }
 0xafe   :  { %v1120_v46 = vpop.f32.mrf.mxu2 }
 0xb06   :  { %v1218_v12 = vpop.f32.mrf.mxu2 }
 0xb0e   :  { %v1220_v14 = vpop.f32.mrf.mxu2 }
 0xb6f   :  { %v1128_v47 = vpop.xlane.xlu2 %1127 }
 0xb70   :  { %v1129_v49 = vmul.f32 %v1128_v47, %v1836_v57 }
 0xb72   :  { %v1130_v50 = vsub.f32 %v1122_v44, %v1129_v49 }
 0xb74   :  { %v1131_v51 = vmul.f32 %v1130_v50, %v1130_v50 }
 0xb76   :  { %v1132_v52 = vsel %vm309_vm3, %v1131_v51, 0.0 }
 0xb77   :  { %1133 = vadd.xlane.f32.xlu0 %v1132_v52 }
 0xbea   :  { %v1134_v63 = vpop.xlane.xlu0 %1133 }
 0xbeb   :  { %v1135_v0 = vmul.f32 %v1134_v63, %v1836_v57  ;;  %v1124_v57 = vld [vmem:[%s2195_s1 + $0x23] ss:$0 sm:$0xff] }
 0xbed   :  { %v1136_v1 = vadd.f32 1e-05, %v1135_v0 }
 0xbef   :  { %1709 = vrsqrt.f32 %v1136_v1  ;;  %vm1143_vm5 = vweird.f32 %v1136_v1 }
 0xbf5   :  { %v1710_v2 = vpop.eup %1709 }
 0xbf6   :  { %v1138_v3 = vmul.f32 %v1710_v2, %v1136_v1  ;;  %vm1144_vm2 = vweird.f32 %v1710_v2 }
 0xbf7   :  { %vm1145_vm6 = vmor %vm1143_vm5, %vm1144_vm2 }
 0xbf8   :  { %v1139_v4 = vmul.f32 %v1710_v2, %v1138_v3 }
 0xbfa   :  { %v1140_v5 = vmul.f32 0.5, %v1139_v4 }
 0xbfc   :  { %v1141_v6 = vsub.f32 1.5, %v1140_v5 }
 0xbfe   :  { %v1142_v7 = vmul.f32 %v1710_v2, %v1141_v6 }
 0xc00   :  { %v1146_v20 = vsel %vm1145_vm6, %v1710_v2, %v1142_v7 }
 0xc01   :  { %v1147_v9 = vmul.f32 %v1146_v20, %v1130_v50 }
 0xc03   :  { %v1148_v10 = vmul.f32 %v1147_v9, %v1123_v8 }
 0xc05   :  { %v1149_v11 = vadd.f32 %v1148_v10, %v1124_v57 }
 0xc07   :  { %v1150_v30 = vpack.c.bf16 %v1149_v11, %v1149_v11 }
 0xc09   :  { %1596 = vmatmul.msk.bf16.vlgmr.msra.gmra.mxu1 %vm395_vm8, %v1150_v30 }
 0xc86   :  { %v1195_v16 = vpop.f32.mrf.mxu1 }
 0xc87   :  { %v1196_v17 = vadd.f32 %v1195_v16, %v1125_v15 }
 0xc89   :  { %v1219_v18 = vadd.f32 %v1218_v12, %v1196_v17 }
 0xc8b   :  { %v1222_v19 = vpack.c.bf16 %v1219_v18, %v1219_v18 }
 0xc8d   :  { %1606 = vmatmul.msk.bf16.vlgmr.msrb.gmra.mxu3 %vm41_vm0, %v1222_v19 }
 0xc8e   :  { %v1197_v21 = vpop.f32.mrf.mxu1 }
 0xd10   :  { %v1251_v22 = vpop.f32.mrf.mxu3 }
 0xd11   :  { %1255 = vst.msk [vmem:[#allocation2] sm:$0x3] %vm309_vm3, %v1251_v22 }
 0xd12   :  { %1266 = dma.vmem_to_hbm [thread:$0]  %s1262_s18, 32, %s1264_s21, [#allocation3]  }
 0xd18   :  { %v1253_v23 = vpop.f32.mrf.mxu3 }
 0xd19   :  { %1735 = dma.done.wait [#allocation3], 32  }
 0xd1a   :  { %1736 = vsyncadd [#allocation3], 4294967264 }
 0xd1b   :  { %1271 = vsyncpa [#allocation3], 1 }

</bundles_post_ra>
